<compile_context>
chip_gen: v7x
topology: tpu7x:2x2x1
jax: 0.10.0
libtpu: 0.0.40
codegen_flags: <defaults>
</compile_context>

<pallas_src>
import functools
import math

import jax
import jax.numpy as jnp
from jax.experimental import pallas as pl
from jax.experimental.pallas import tpu as pltpu


# ----------------------------------------------------------------------------
# tiling helpers
# ----------------------------------------------------------------------------
def _round_up(x, m):
    return ((x + m - 1) // m) * m


def _row_tile(M, dtype, target=256):
    """Row tile: multiple of 8 (f32) / 16 (bf16); full M for small inputs."""
    mult = 16 if jnp.dtype(dtype) == jnp.dtype(jnp.bfloat16) else 8
    return target if M >= target else _round_up(max(M, 1), mult)


def _col_tile(N, target=512):
    """Column / reduction chunk: full dim for small or non-128-multiple N,
    else an exact divisor of N that is a multiple of 128 (so streamed chunks
    never read garbage into the accumulator)."""
    if N <= target or N % 128 != 0:
        return N
    for t in (target, 256, 128):
        if N % t == 0:
            return t
    return N


def _norm_rows(s, alpha_ref, bias_ref, eps):
    """torch-style Norm on f32 rows: alpha*(s-mean)/(unbiased_std+eps)+bias."""
    d_model = s.shape[-1]
    mean = jnp.mean(s, axis=-1, keepdims=True)
    d = s - mean
    var = jnp.sum(d * d, axis=-1, keepdims=True) * (1.0 / (d_model - 1))
    inv = pl.reciprocal(jnp.sqrt(var) + eps, approx=False)
    return (alpha_ref[...].astype(jnp.float32) * d * inv
            + bias_ref[...].astype(jnp.float32))


# ----------------------------------------------------------------------------
# Plain linear:  y = x @ W + b     (used for the fused QKV / Q / KV projections)
# Weight stored pre-transposed: (in_features, out_features).
# Grid: (columns OUTER, rows inner) so the weight tile stays resident across
# the inner row loop (fetched once from HBM instead of once per row tile).
# ----------------------------------------------------------------------------
def linear_kernel(x_ref, w_ref, b_ref, o_ref):
    y = jnp.dot(x_ref[...], w_ref[...], preferred_element_type=jnp.float32)
    o_ref[...] = (y + b_ref[...].astype(jnp.float32)).astype(o_ref.dtype)


def linear(x2d, w, b, *, tm_target=256, tn_target=512):
    M, K = x2d.shape
    N = w.shape[1]
    tm = _row_tile(M, x2d.dtype, tm_target)
    tn = _col_tile(N, tn_target)
    return pl.pallas_call(
        linear_kernel,
        out_shape=jax.ShapeDtypeStruct((M, N), x2d.dtype),
        grid_spec=pltpu.PrefetchScalarGridSpec(
            num_scalar_prefetch=0,
            grid=(N // tn, pl.cdiv(M, tm)),           # j outer, i inner
            in_specs=[
                pl.BlockSpec((tm, K), lambda j, i: (i, 0)),
                pl.BlockSpec((K, tn), lambda j, i: (0, j)),   # resident over i
                pl.BlockSpec((1, tn), lambda j, i: (0, j)),
            ],
            out_specs=pl.BlockSpec((tm, tn), lambda j, i: (i, j)),
        ),
        compiler_params=pltpu.CompilerParams(
            dimension_semantics=("parallel", "parallel")),
    )(x2d, w, b.reshape(1, N))


# ----------------------------------------------------------------------------
# Attention: one (batch, q-row-tile) block per grid step, all heads in-kernel.
# q/k/v columns are sliced straight out of the fused projection blocks, so no
# head-split/merge transposes (and no extra HBM copies) are needed.
#   self-attention : q_src == kv_src == qkv (B, S, 3D);  offsets 0 / D / 2D
#   cross-attention: q_src = (B, Sq, D), kv_src = (B, Skv, 2D); offsets 0/0/D
# ----------------------------------------------------------------------------
def attention_kernel(q_src_ref, kv_src_ref, mask_ref, o_ref, *,
                     heads, dk, q_off, k_off, v_off, scale):
    # TODO(synk): attention-score dropout is identity (eval mode).
    keep = mask_ref[...] != 0                      # (1, Skv), broadcasts over rows
    for h in range(heads):                         # static unroll
        q = q_src_ref[:, q_off + h * dk: q_off + (h + 1) * dk] * scale   # (tq, dk)
        k = kv_src_ref[:, k_off + h * dk: k_off + (h + 1) * dk]          # (Skv, dk)
        v = kv_src_ref[:, v_off + h * dk: v_off + (h + 1) * dk]          # (Skv, dk)
        s = jnp.einsum("qd,kd->qk", q, k,
                       preferred_element_type=jnp.float32)               # (tq, Skv)
        s = jnp.where(keep, s, -1e9)
        m = jnp.max(s, axis=-1, keepdims=True)
        p = jnp.exp(s - m)
        denom = jnp.sum(p, axis=-1, keepdims=True)
        o_h = jnp.dot(p.astype(v.dtype), v, preferred_element_type=jnp.float32)
        o_h = o_h * pl.reciprocal(denom, approx=False)   # normalize after PV (O(tq*dk))
        o_ref[:, h * dk:(h + 1) * dk] = o_h.astype(o_ref.dtype)


def _attention(q_src, kv_src, mask, *, heads, d_model, q_off, k_off, v_off):
    B, Sq, qw = q_src.shape
    Skv, kvw = kv_src.shape[1], kv_src.shape[2]
    dk = d_model // heads
    scale = 1.0 / math.sqrt(dk)
    tq = Sq if Sq <= 256 else 256
    kernel = functools.partial(attention_kernel, heads=heads, dk=dk,
                               q_off=q_off, k_off=k_off, v_off=v_off, scale=scale)
    return pl.pallas_call(
        kernel,
        out_shape=jax.ShapeDtypeStruct((B, Sq, d_model), q_src.dtype),
        grid_spec=pltpu.PrefetchScalarGridSpec(
            num_scalar_prefetch=0,
            grid=(B, pl.cdiv(Sq, tq)),
            in_specs=[
                pl.BlockSpec((None, tq, qw), lambda b, i: (b, i, 0)),
                pl.BlockSpec((None, Skv, kvw), lambda b, i: (b, 0, 0)),  # resident over i
                pl.BlockSpec((None, 1, Skv), lambda b, i: (b, 0, 0)),
            ],
            out_specs=pl.BlockSpec((None, tq, d_model), lambda b, i: (b, i, 0)),
        ),
        compiler_params=pltpu.CompilerParams(
            dimension_semantics=("parallel", "parallel")),
    )(q_src, kv_src, mask)


def self_attention(qkv, mask, heads, d_model):
    return _attention(qkv, qkv, mask, heads=heads, d_model=d_model,
                      q_off=0, k_off=d_model, v_off=2 * d_model)


def cross_attention(q, kv, mask, heads, d_model):
    return _attention(q, kv, mask, heads=heads, d_model=d_model,
                      q_off=0, k_off=0, v_off=d_model)


# ----------------------------------------------------------------------------
# Fused out-projection + residual + Norm:
#   out = Norm(residual + x @ W + b)
# Streamed K reduction (grid axis 1) with f32 VMEM accumulator; norm needs the
# full d_model row, so the output is not column-tiled.
# ----------------------------------------------------------------------------
def linear_residual_norm_kernel(x_ref, w_ref, b_ref, res_ref, alpha_ref, bias_ref,
                                o_ref, acc_ref, *, eps):
    k = pl.program_id(1)

    @pl.when(k == 0)
    def _():
        acc_ref[...] = jnp.zeros_like(acc_ref)

    acc_ref[...] += jnp.dot(x_ref[...], w_ref[...],
                            preferred_element_type=jnp.float32)

    @pl.when(k == pl.num_programs(1) - 1)
    def _():
        # TODO(synk): dropout on the attention output is identity (eval mode).
        s = (acc_ref[...] + b_ref[...].astype(jnp.float32)
             + res_ref[...].astype(jnp.float32))
        o_ref[...] = _norm_rows(s, alpha_ref, bias_ref, eps).astype(o_ref.dtype)


def linear_residual_norm(x2d, w, b, res2d, alpha, bias, *, eps=1e-6,
                         tm_target=256, tk_target=512):
    M, K = x2d.shape
    D = w.shape[1]
    tm = _row_tile(M, x2d.dtype, tm_target)
    tk = _col_tile(K, tk_target)

    itemsize = jnp.dtype(x2d.dtype).itemsize
    blk = (tm * tk + tk * D + D + tm * D + 2 * D + tm * D) * itemsize
    est = 2 * blk + tm * D * 4
    vmem_limit = int(min(max(4 * est, 8 << 20), 56 << 20))   # v7x headroom

    return pl.pallas_call(
        functools.partial(linear_residual_norm_kernel, eps=eps),
        out_shape=jax.ShapeDtypeStruct((M, D), x2d.dtype),
        grid_spec=pltpu.PrefetchScalarGridSpec(
            num_scalar_prefetch=0,
            grid=(pl.cdiv(M, tm), K // tk),          # rows parallel, K reduction last
            in_specs=[
                pl.BlockSpec((tm, tk), lambda i, k: (i, k)),
                pl.BlockSpec((tk, D), lambda i, k: (k, 0)),
                pl.BlockSpec((1, D), lambda i, k: (0, 0)),
                pl.BlockSpec((tm, D), lambda i, k: (i, 0)),   # residual (resident over k)
                pl.BlockSpec((1, D), lambda i, k: (0, 0)),    # alpha
                pl.BlockSpec((1, D), lambda i, k: (0, 0)),    # bias
            ],
            out_specs=pl.BlockSpec((tm, D), lambda i, k: (i, 0)),
            scratch_shapes=[pltpu.VMEM((tm, D), jnp.float32)],
        ),
        compiler_params=pltpu.CompilerParams(
            dimension_semantics=("parallel", "arbitrary"),
            vmem_limit_bytes=vmem_limit),
    )(x2d, w, b.reshape(1, D), res2d, alpha.reshape(1, D), bias.reshape(1, D))


# ----------------------------------------------------------------------------
# Fused FFN + residual + Norm:
#   out = Norm(x + relu(x @ w1 + b1) @ w2 + b2)
# d_ff streamed as a reduction axis; x doubles as the residual (resident tile),
# so no separate residual stream is needed.
# ----------------------------------------------------------------------------
def ffn_residual_norm_kernel(x_ref, w1_ref, b1_ref, w2_ref, b2_ref,
                             alpha_ref, bias_ref, o_ref, acc_ref, *, eps):
    j = pl.program_id(1)

    @pl.when(j == 0)
    def _():
        acc_ref[...] = jnp.zeros_like(acc_ref)

    x = x_ref[...]
    h = jnp.dot(x, w1_ref[...], preferred_element_type=jnp.float32)
    h = jnp.maximum(h + b1_ref[...].astype(jnp.float32), 0.0)
    # TODO(synk): FFN dropout is identity (eval mode).
    # h cast back to the input dtype keeps the second matmul on the fast
    # (bf16) MXU path; accumulation stays f32.
    acc_ref[...] += jnp.dot(h.astype(x.dtype), w2_ref[...],
                            preferred_element_type=jnp.float32)

    @pl.when(j == pl.num_programs(1) - 1)
    def _():
        s = (acc_ref[...] + b2_ref[...].astype(jnp.float32)
             + x_ref[...].astype(jnp.float32))       # x is the residual
        o_ref[...] = _norm_rows(s, alpha_ref, bias_ref, eps).astype(o_ref.dtype)


def ffn_residual_norm(x2d, w1, b1, w2, b2, alpha, bias, *, eps=1e-6,
                      tm_target=256, tf_target=512):
    M, D = x2d.shape
    d_ff = w1.shape[1]
    tm = _row_tile(M, x2d.dtype, tm_target)
    tf = _col_tile(d_ff, tf_target)

    itemsize = jnp.dtype(x2d.dtype).itemsize
    blk = (tm * D + D * tf + tf + tf * D + D + 2 * D + tm * D) * itemsize
    est = 2 * blk + tm * D * 4
    vmem_limit = int(min(max(4 * est, 8 << 20), 56 << 20))   # v7x headroom
    # NOTE: on v5e/v6e (128 MiB VMEM) tm/tf targets and this cap can be raised.

    return pl.pallas_call(
        functools.partial(ffn_residual_norm_kernel, eps=eps),
        out_shape=jax.ShapeDtypeStruct((M, D), x2d.dtype),
        grid_spec=pltpu.PrefetchScalarGridSpec(
            num_scalar_prefetch=0,
            grid=(pl.cdiv(M, tm), d_ff // tf),       # rows parallel, d_ff reduction last
            in_specs=[
                pl.BlockSpec((tm, D), lambda i, j: (i, 0)),     # x (resident over j)
                pl.BlockSpec((D, tf), lambda i, j: (0, j)),     # w1 chunk
                pl.BlockSpec((1, tf), lambda i, j: (0, j)),     # b1 chunk
                pl.BlockSpec((tf, D), lambda i, j: (j, 0)),     # w2 chunk
                pl.BlockSpec((1, D), lambda i, j: (0, 0)),      # b2
                pl.BlockSpec((1, D), lambda i, j: (0, 0)),      # alpha
                pl.BlockSpec((1, D), lambda i, j: (0, 0)),      # bias
            ],
            out_specs=pl.BlockSpec((tm, D), lambda i, j: (i, 0)),
            scratch_shapes=[pltpu.VMEM((tm, D), jnp.float32)],
        ),
        compiler_params=pltpu.CompilerParams(
            dimension_semantics=("parallel", "arbitrary"),
            vmem_limit_bytes=vmem_limit),
    )(x2d, w1, b1.reshape(1, d_ff), w2, b2.reshape(1, D),
      alpha.reshape(1, D), bias.reshape(1, D))


# ----------------------------------------------------------------------------
# DecoderLayer forward
# ----------------------------------------------------------------------------
@functools.partial(jax.jit, static_argnames=("heads",))
def decoder_layer(x, enc_output, src_mask, tgt_mask, params, heads):
    # TODO(synk): dropout_1/2/3 are identity (eval mode).
    B, S, D = x.shape
    Se = enc_output.shape[1]
    x2 = x.reshape(B * S, D)

    # --- self-attention + norm1 ---
    p1 = params["attn1"]
    qkv = linear(x2, p1["wqkv"], p1["bqkv"]).reshape(B, S, 3 * D)
    a1 = self_attention(qkv, tgt_mask, heads, D).reshape(B * S, D)
    x2 = linear_residual_norm(a1, p1["wo"], p1["bo"], x2,
                              params["norm1"]["alpha"], params["norm1"]["bias"])

    # --- cross-attention + norm2 ---
    p2 = params["attn2"]
    q = linear(x2, p2["wq"], p2["bq"]).reshape(B, S, D)
    kv = linear(enc_output.reshape(B * Se, D),
                p2["wkv"], p2["bkv"]).reshape(B, Se, 2 * D)
    a2 = cross_attention(q, kv, src_mask, heads, D).reshape(B * S, D)
    x2 = linear_residual_norm(a2, p2["wo"], p2["bo"], x2,
                              params["norm2"]["alpha"], params["norm2"]["bias"])

    # --- FFN + norm3 (single fused kernel) ---
    x2 = ffn_residual_norm(x2, params["ffn"]["w1"], params["ffn"]["b1"],
                           params["ffn"]["w2"], params["ffn"]["b2"],
                           params["norm3"]["alpha"], params["norm3"]["bias"])
    return x2.reshape(B, S, D)


# ----------------------------------------------------------------------------
# Parameter init (nn.Linear-style; weights pre-transposed to (in, out) and the
# q/k/v (resp. k/v) weights pre-fused at construction time, outside jit).
# ----------------------------------------------------------------------------
def _linear_init(key, fan_in, fan_out, dtype):
    k1, k2 = jax.random.split(key)
    lim = 1.0 / (fan_in ** 0.5)
    w = jax.random.uniform(k1, (fan_in, fan_out), dtype, -lim, lim)
    b = jax.random.uniform(k2, (fan_out,), dtype, -lim, lim)
    return w, b


def init_decoder_params(key, d_model, d_ff, dtype=jnp.float32):
    keys = jax.random.split(key, 13)

    def attn_self(ks):
        wq, bq = _linear_init(ks[0], d_model, d_model, dtype)
        wk, bk = _linear_init(ks[1], d_model, d_model, dtype)
        wv, bv = _linear_init(ks[2], d_model, d_model, dtype)
        wo, bo = _linear_init(ks[3], d_model, d_model, dtype)
        return dict(wqkv=jnp.concatenate([wq, wk, wv], axis=1),
                    bqkv=jnp.concatenate([bq, bk, bv]),
                    wo=wo, bo=bo)

    def attn_cross(ks):
        wq, bq = _linear_init(ks[0], d_model, d_model, dtype)
        wk, bk = _linear_init(ks[1], d_model, d_model, dtype)
        wv, bv = _linear_init(ks[2], d_model, d_model, dtype)
        wo, bo = _linear_init(ks[3], d_model, d_model, dtype)
        return dict(wq=wq, bq=bq,
                    wkv=jnp.concatenate([wk, wv], axis=1),
                    bkv=jnp.concatenate([bk, bv]),
                    wo=wo, bo=bo)

    def norm(k):
        k1, k2 = jax.random.split(k)
        alpha = (1.0 + 0.1 * jax.random.normal(k1, (d_model,))).astype(dtype)
        bias = (0.1 * jax.random.normal(k2, (d_model,))).astype(dtype)
        return dict(alpha=alpha, bias=bias)

    w1, b1 = _linear_init(keys[8], d_model, d_ff, dtype)
    w2, b2 = _linear_init(keys[9], d_ff, d_model, dtype)
    return dict(attn1=attn_self(keys[0:4]), attn2=attn_cross(keys[4:8]),
                ffn=dict(w1=w1, b1=b1, w2=w2, b2=b2),
                norm1=norm(keys[10]), norm2=norm(keys[11]), norm3=norm(keys[12]))


# ----------------------------------------------------------------------------
# Pure-JAX reference (torch semantics, dropout = identity)
# ----------------------------------------------------------------------------
def _ref_norm(x, alpha, bias, eps=1e-6):
    mean = x.mean(-1, keepdims=True)
    var = ((x - mean) ** 2).sum(-1, keepdims=True) / (x.shape[-1] - 1)
    return alpha * (x - mean) / (jnp.sqrt(var) + eps) + bias


def _ref_mha(q_in, k_in, v_in, mask, wq, bq, wk, bk, wv, bv, wo, bo, heads):
    B, Sq, D = q_in.shape
    Skv = k_in.shape[1]
    dk = D // heads
    q = (q_in @ wq + bq).reshape(B, Sq, heads, dk).transpose(0, 2, 1, 3)
    k = (k_in @ wk + bk).reshape(B, Skv, heads, dk).transpose(0, 2, 1, 3)
    v = (v_in @ wv + bv).reshape(B, Skv, heads, dk).transpose(0, 2, 1, 3)
    scores = jnp.einsum("bhqd,bhkd->bhqk", q, k) * (1.0 / math.sqrt(dk))
    scores = jnp.where(mask[:, None, :, :] == 0, -1e9, scores)
    probs = jax.nn.softmax(scores, axis=-1)
    out = jnp.einsum("bhqk,bhkd->bhqd", probs, v)
    concat = out.transpose(0, 2, 1, 3).reshape(B, Sq, D)
    return concat @ wo + bo


def _ref_decoder(x, enc, src_mask, tgt_mask, params, heads):
    D = x.shape[-1]
    p1 = params["attn1"]
    a1 = _ref_mha(x, x, x, tgt_mask,
                  p1["wqkv"][:, :D], p1["bqkv"][:D],
                  p1["wqkv"][:, D:2 * D], p1["bqkv"][D:2 * D],
                  p1["wqkv"][:, 2 * D:], p1["bqkv"][2 * D:],
                  p1["wo"], p1["bo"], heads)
    x = _ref_norm(x + a1, params["norm1"]["alpha"], params["norm1"]["bias"])
    p2 = params["attn2"]
    a2 = _ref_mha(x, enc, enc, src_mask,
                  p2["wq"], p2["bq"],
                  p2["wkv"][:, :D], p2["bkv"][:D],
                  p2["wkv"][:, D:], p2["bkv"][D:],
                  p2["wo"], p2["bo"], heads)
    x = _ref_norm(x + a2, params["norm2"]["alpha"], params["norm2"]["bias"])
    ff = (jnp.maximum(x @ params["ffn"]["w1"] + params["ffn"]["b1"], 0.0)
          @ params["ffn"]["w2"] + params["ffn"]["b2"])
    x = _ref_norm(x + ff, params["norm3"]["alpha"], params["norm3"]["bias"])
    return x


if __name__ == "__main__":
    key = jax.random.PRNGKey(0)
    B, S_tgt, S_src, d_model, heads, d_ff = 2, 8, 8, 32, 4, 64

    ks = jax.random.split(key, 4)
    x = jax.random.normal(ks[0], (B, S_tgt, d_model), jnp.float32)
    enc = jax.random.normal(ks[1], (B, S_src, d_model), jnp.float32)
    # masks: 1 = keep, 0 = padded/future (shape (batch, 1, seq_len) per spec)
    tgt_len = jnp.array([8, 6])
    src_len = jnp.array([7, 8])
    tgt_mask = (jnp.arange(S_tgt)[None, :] < tgt_len[:, None]
                ).astype(jnp.float32)[:, None, :]
    src_mask = (jnp.arange(S_src)[None, :] < src_len[:, None]
                ).astype(jnp.float32)[:, None, :]
    params = init_decoder_params(ks[2], d_model, d_ff, jnp.float32)

    out = decoder_layer(x, enc, src_mask, tgt_mask, params, heads=heads)
    out = jax.block_until_ready(out)
    assert out.shape == (B, S_tgt, d_model)

    with jax.default_matmul_precision("highest"):
        ref = _ref_decoder(x, enc, src_mask, tgt_mask, params, heads)
    max_err = float(jnp.max(jnp.abs(out - ref)))
    assert jnp.allclose(out, ref, atol=1e-4, rtol=1e-4), max_err

    # bf16 smoke run (perf dtype on v6e/v7x): shape / finiteness check only.
    xb, encb = x.astype(jnp.bfloat16), enc.astype(jnp.bfloat16)
    pb = jax.tree_util.tree_map(lambda a: a.astype(jnp.bfloat16), params)
    outb = jax.block_until_ready(
        decoder_layer(xb, encb, src_mask, tgt_mask, pb, heads=heads))
    assert outb.shape == (B, S_tgt, d_model) and outb.dtype == jnp.bfloat16
    assert bool(jnp.all(jnp.isfinite(outb.astype(jnp.float32))))

    print("KERNEL_OK")
</pallas_src>

<mosaic_0001>
module attributes {stable_mosaic.version = 11 : i64} {
  func.func @linear_residual_norm_kernel(%arg0: i32, %arg1: i32, %arg2: memref<16x32xf32, #tpu.memory_space<vmem>>, %arg3: memref<32x32xf32, #tpu.memory_space<vmem>>, %arg4: memref<1x32xf32, #tpu.memory_space<vmem>>, %arg5: memref<16x32xf32, #tpu.memory_space<vmem>>, %arg6: memref<1x32xf32, #tpu.memory_space<vmem>>, %arg7: memref<1x32xf32, #tpu.memory_space<vmem>>, %arg8: memref<16x32xf32, #tpu.memory_space<vmem>>, %arg9: memref<16x32xf32, #tpu.memory_space<vmem>>) attributes {dimension_semantics = [#tpu.dimension_semantics<parallel>, #tpu.dimension_semantics<arbitrary>], iteration_bounds = array<i64: 1, 1>, scalar_prefetch = 0 : i64, scratch_operands = 1 : i64, tpu.core_type = #tpu.core_type<tc>, window_params = [{transform_indices = @transform_0, window_bounds = array<i64: 16, 32>}, {transform_indices = @transform_1, window_bounds = array<i64: 32, 32>}, {pipeline_mode = #tpu.pipeline_mode<synchronous>, transform_indices = @transform_2, window_bounds = array<i64: 1, 32>}, {transform_indices = @transform_3, window_bounds = array<i64: 16, 32>}, {pipeline_mode = #tpu.pipeline_mode<synchronous>, transform_indices = @transform_4, window_bounds = array<i64: 1, 32>}, {pipeline_mode = #tpu.pipeline_mode<synchronous>, transform_indices = @transform_5, window_bounds = array<i64: 1, 32>}, {transform_indices = @transform_6, window_bounds = array<i64: 16, 32>}]} {
    %c0_i32 = arith.constant 0 : i32
    %0 = arith.cmpi eq, %arg1, %c0_i32 : i32
    %1 = arith.extui %0 : i1 to i32
    %c0_i32_0 = arith.constant 0 : i32
    %2 = arith.cmpi ne, %1, %c0_i32_0 : i32
    scf.if %2 {
      %cst_10 = arith.constant 0.000000e+00 : f32
      %12 = vector.broadcast %cst_10 : f32 to vector<16x32xf32>
      %c0_11 = arith.constant 0 : index
      %c0_12 = arith.constant 0 : index
      %13 = vector.load %arg9[%c0_11, %c0_12] : memref<16x32xf32, #tpu.memory_space<vmem>>, vector<16x32xf32>
      tpu.vector_store %arg9[%c0_11, %c0_12], %12 {strides = array<i32>} : memref<16x32xf32, #tpu.memory_space<vmem>>, vector<16x32xf32>,
    } else {
    }
    %c0 = arith.constant 0 : index
    %c0_1 = arith.constant 0 : index
    %3 = vector.load %arg9[%c0, %c0_1] : memref<16x32xf32, #tpu.memory_space<vmem>>, vector<16x32xf32>
    %c0_2 = arith.constant 0 : index
    %c0_3 = arith.constant 0 : index
    %4 = vector.load %arg2[%c0_2, %c0_3] : memref<16x32xf32, #tpu.memory_space<vmem>>, vector<16x32xf32>
    %c0_4 = arith.constant 0 : index
    %c0_5 = arith.constant 0 : index
    %5 = vector.load %arg3[%c0_4, %c0_5] : memref<32x32xf32, #tpu.memory_space<vmem>>, vector<32x32xf32>
    %cst = arith.constant dense<0.000000e+00> : vector<16x32xf32>
    %6 = tpu.matmul %4, %5, %cst {dimension_numbers = #tpu.dot_dimension_numbers<[1], [0], [0], [1], [0, 0, 1, 1], [], []>} : vector<16x32xf32>, vector<32x32xf32>, vector<16x32xf32> -> vector<16x32xf32>
    %7 = arith.addf %3, %6 : vector<16x32xf32>
    %c0_6 = arith.constant 0 : index
    %c0_7 = arith.constant 0 : index
    %8 = vector.load %arg9[%c0_6, %c0_7] : memref<16x32xf32, #tpu.memory_space<vmem>>, vector<16x32xf32>
    tpu.vector_store %arg9[%c0_6, %c0_7], %7 {strides = array<i32>} : memref<16x32xf32, #tpu.memory_space<vmem>>, vector<16x32xf32>,
    %c0_i32_8 = arith.constant 0 : i32
    %9 = arith.cmpi eq, %arg1, %c0_i32_8 : i32
    %10 = arith.extui %9 : i1 to i32
    %c0_i32_9 = arith.constant 0 : i32
    %11 = arith.cmpi ne, %10, %c0_i32_9 : i32
    scf.if %11 {
      %c0_10 = arith.constant 0 : index
      %c0_11 = arith.constant 0 : index
      %12 = vector.load %arg9[%c0_10, %c0_11] : memref<16x32xf32, #tpu.memory_space<vmem>>, vector<16x32xf32>
      %c0_12 = arith.constant 0 : index
      %c0_13 = arith.constant 0 : index
      %13 = vector.load %arg4[%c0_12, %c0_13] : memref<1x32xf32, #tpu.memory_space<vmem>>, vector<1x32xf32>
      %14 = vector.broadcast %13 : vector<1x32xf32> to vector<16x32xf32>
      %15 = arith.addf %12, %14 : vector<16x32xf32>
      %c0_14 = arith.constant 0 : index
      %c0_15 = arith.constant 0 : index
      %16 = vector.load %arg5[%c0_14, %c0_15] : memref<16x32xf32, #tpu.memory_space<vmem>>, vector<16x32xf32>
      %17 = arith.addf %15, %16 : vector<16x32xf32>
      %cst_16 = arith.constant dense<0.000000e+00> : vector<16xf32>
      %18 = vector.multi_reduction <add>, %17, %cst_16 [1] : vector<16x32xf32> to vector<16xf32>
      %19 = vector.shape_cast %18 : vector<16xf32> to vector<16x1xf32>
      %cst_17 = arith.constant 3.200000e+01 : f32
      %20 = vector.broadcast %cst_17 : f32 to vector<16x1xf32>
      %21 = arith.divf %19, %20 : vector<16x1xf32>
      %22 = vector.broadcast %21 : vector<16x1xf32> to vector<16x32xf32>
      %23 = arith.subf %17, %22 : vector<16x32xf32>
      %24 = arith.mulf %23, %23 : vector<16x32xf32>
      %cst_18 = arith.constant dense<0.000000e+00> : vector<16xf32>
      %25 = vector.multi_reduction <add>, %24, %cst_18 [1] : vector<16x32xf32> to vector<16xf32>
      %26 = vector.shape_cast %25 : vector<16xf32> to vector<16x1xf32>
      %cst_19 = arith.constant 0.0322580636 : f32
      %27 = vector.broadcast %cst_19 : f32 to vector<16x1xf32>
      %28 = arith.mulf %26, %27 : vector<16x1xf32>
      %29 = math.sqrt %28 : vector<16x1xf32>
      %cst_20 = arith.constant 9.99999997E-7 : f32
      %30 = vector.broadcast %cst_20 : f32 to vector<16x1xf32>
      %31 = arith.addf %29, %30 : vector<16x1xf32>
      %32 = tpu.reciprocal %31 : vector<16x1xf32> -> vector<16x1xf32>
      %c0_21 = arith.constant 0 : index
      %c0_22 = arith.constant 0 : index
      %33 = vector.load %arg6[%c0_21, %c0_22] : memref<1x32xf32, #tpu.memory_space<vmem>>, vector<1x32xf32>
      %34 = vector.broadcast %33 : vector<1x32xf32> to vector<16x32xf32>
      %35 = arith.mulf %34, %23 : vector<16x32xf32>
      %36 = vector.broadcast %32 : vector<16x1xf32> to vector<16x32xf32>
      %37 = arith.mulf %35, %36 : vector<16x32xf32>
      %c0_23 = arith.constant 0 : index
      %c0_24 = arith.constant 0 : index
      %38 = vector.load %arg7[%c0_23, %c0_24] : memref<1x32xf32, #tpu.memory_space<vmem>>, vector<1x32xf32>
      %39 = vector.broadcast %38 : vector<1x32xf32> to vector<16x32xf32>
      %40 = arith.addf %37, %39 : vector<16x32xf32>
      %c0_25 = arith.constant 0 : index
      %c0_26 = arith.constant 0 : index
      %41 = vector.load %arg8[%c0_25, %c0_26] : memref<16x32xf32, #tpu.memory_space<vmem>>, vector<16x32xf32>
      tpu.vector_store %arg8[%c0_25, %c0_26], %40 {strides = array<i32>} : memref<16x32xf32, #tpu.memory_space<vmem>>, vector<16x32xf32>,
    } else {
    }
    return
  }
  func.func @transform_0(%arg0: i32, %arg1: i32) -> (i32, i32) {
    %c0_i32 = arith.constant 0 : i32
    return %arg0, %arg1 : i32, i32
  }
  func.func @transform_1(%arg0: i32, %arg1: i32) -> (i32, i32) {
    %c0_i32 = arith.constant 0 : i32
    %c0_i32_0 = arith.constant 0 : i32
    return %arg1, %c0_i32 : i32, i32
  }
  func.func @transform_2(%arg0: i32, %arg1: i32) -> (i32, i32) {
    %c0_i32 = arith.constant 0 : i32
    %c0_i32_0 = arith.constant 0 : i32
    %c0_i32_1 = arith.constant 0 : i32
    return %c0_i32, %c0_i32_0 : i32, i32
  }
  func.func @transform_3(%arg0: i32, %arg1: i32) -> (i32, i32) {
    %c0_i32 = arith.constant 0 : i32
    %c0_i32_0 = arith.constant 0 : i32
    return %arg0, %c0_i32 : i32, i32
  }
  func.func @transform_4(%arg0: i32, %arg1: i32) -> (i32, i32) {
    %c0_i32 = arith.constant 0 : i32
    %c0_i32_0 = arith.constant 0 : i32
    %c0_i32_1 = arith.constant 0 : i32
    return %c0_i32, %c0_i32_0 : i32, i32
  }
  func.func @transform_5(%arg0: i32, %arg1: i32) -> (i32, i32) {
    %c0_i32 = arith.constant 0 : i32
    %c0_i32_0 = arith.constant 0 : i32
    %c0_i32_1 = arith.constant 0 : i32
    return %c0_i32, %c0_i32_0 : i32, i32
  }
  func.func @transform_6(%arg0: i32, %arg1: i32) -> (i32, i32) {
    %c0_i32 = arith.constant 0 : i32
    %c0_i32_0 = arith.constant 0 : i32
    return %arg0, %c0_i32 : i32, i32
  }
}

module attributes {stable_mosaic.version = 11 : i64} {
  func.func @linear_kernel(%arg0: i32, %arg1: i32, %arg2: memref<16x32xf32, #tpu.memory_space<vmem>>, %arg3: memref<32x32xf32, #tpu.memory_space<vmem>>, %arg4: memref<1x32xf32, #tpu.memory_space<vmem>>, %arg5: memref<16x32xf32, #tpu.memory_space<vmem>>) attributes {dimension_semantics = [#tpu.dimension_semantics<parallel>, #tpu.dimension_semantics<parallel>], iteration_bounds = array<i64: 1, 1>, scalar_prefetch = 0 : i64, scratch_operands = 0 : i64, tpu.core_type = #tpu.core_type<tc>, window_params = [{transform_indices = @transform_0, window_bounds = array<i64: 16, 32>}, {transform_indices = @transform_1, window_bounds = array<i64: 32, 32>}, {transform_indices = @transform_2, window_bounds = array<i64: 1, 32>}, {transform_indices = @transform_3, window_bounds = array<i64: 16, 32>}]} {
    %c0 = arith.constant 0 : index
    %c0_0 = arith.constant 0 : index
    %0 = vector.load %arg2[%c0, %c0_0] : memref<16x32xf32, #tpu.memory_space<vmem>>, vector<16x32xf32>
    %c0_1 = arith.constant 0 : index
    %c0_2 = arith.constant 0 : index
    %1 = vector.load %arg3[%c0_1, %c0_2] : memref<32x32xf32, #tpu.memory_space<vmem>>, vector<32x32xf32>
    %cst = arith.constant dense<0.000000e+00> : vector<16x32xf32>
    %2 = tpu.matmul %0, %1, %cst {dimension_numbers = #tpu.dot_dimension_numbers<[1], [0], [0], [1], [0, 0, 1, 1], [], []>} : vector<16x32xf32>, vector<32x32xf32>, vector<16x32xf32> -> vector<16x32xf32>
    %c0_3 = arith.constant 0 : index
    %c0_4 = arith.constant 0 : index
    %3 = vector.load %arg4[%c0_3, %c0_4] : memref<1x32xf32, #tpu.memory_space<vmem>>, vector<1x32xf32>
    %4 = vector.broadcast %3 : vector<1x32xf32> to vector<16x32xf32>
    %5 = arith.addf %2, %4 : vector<16x32xf32>
    %c0_5 = arith.constant 0 : index
    %c0_6 = arith.constant 0 : index
    %6 = vector.load %arg5[%c0_5, %c0_6] : memref<16x32xf32, #tpu.memory_space<vmem>>, vector<16x32xf32>
    tpu.vector_store %arg5[%c0_5, %c0_6], %5 {strides = array<i32>} : memref<16x32xf32, #tpu.memory_space<vmem>>, vector<16x32xf32>,
    return
  }
  func.func @transform_0(%arg0: i32, %arg1: i32) -> (i32, i32) {
    %c0_i32 = arith.constant 0 : i32
    %c0_i32_0 = arith.constant 0 : i32
    return %arg1, %c0_i32 : i32, i32
  }
  func.func @transform_1(%arg0: i32, %arg1: i32) -> (i32, i32) {
    %c0_i32 = arith.constant 0 : i32
    %c0_i32_0 = arith.constant 0 : i32
    return %c0_i32, %arg0 : i32, i32
  }
  func.func @transform_2(%arg0: i32, %arg1: i32) -> (i32, i32) {
    %c0_i32 = arith.constant 0 : i32
    %c0_i32_0 = arith.constant 0 : i32
    return %c0_i32, %arg0 : i32, i32
  }
  func.func @transform_3(%arg0: i32, %arg1: i32) -> (i32, i32) {
    %c0_i32 = arith.constant 0 : i32
    return %arg1, %arg0 : i32, i32
  }
}

module attributes {stable_mosaic.version = 11 : i64} {
  func.func @linear_kernel(%arg0: i32, %arg1: i32, %arg2: memref<16x32xf32, #tpu.memory_space<vmem>>, %arg3: memref<32x96xf32, #tpu.memory_space<vmem>>, %arg4: memref<1x96xf32, #tpu.memory_space<vmem>>, %arg5: memref<16x96xf32, #tpu.memory_space<vmem>>) attributes {dimension_semantics = [#tpu.dimension_semantics<parallel>, #tpu.dimension_semantics<parallel>], iteration_bounds = array<i64: 1, 1>, scalar_prefetch = 0 : i64, scratch_operands = 0 : i64, tpu.core_type = #tpu.core_type<tc>, window_params = [{transform_indices = @transform_0, window_bounds = array<i64: 16, 32>}, {transform_indices = @transform_1, window_bounds = array<i64: 32, 96>}, {transform_indices = @transform_2, window_bounds = array<i64: 1, 96>}, {transform_indices = @transform_3, window_bounds = array<i64: 16, 96>}]} {
    %c0 = arith.constant 0 : index
    %c0_0 = arith.constant 0 : index
    %0 = vector.load %arg2[%c0, %c0_0] : memref<16x32xf32, #tpu.memory_space<vmem>>, vector<16x32xf32>
    %c0_1 = arith.constant 0 : index
    %c0_2 = arith.constant 0 : index
    %1 = vector.load %arg3[%c0_1, %c0_2] : memref<32x96xf32, #tpu.memory_space<vmem>>, vector<32x96xf32>
    %cst = arith.constant dense<0.000000e+00> : vector<16x96xf32>
    %2 = tpu.matmul %0, %1, %cst {dimension_numbers = #tpu.dot_dimension_numbers<[1], [0], [0], [1], [0, 0, 1, 1], [], []>} : vector<16x32xf32>, vector<32x96xf32>, vector<16x96xf32> -> vector<16x96xf32>
    %c0_3 = arith.constant 0 : index
    %c0_4 = arith.constant 0 : index
    %3 = vector.load %arg4[%c0_3, %c0_4] : memref<1x96xf32, #tpu.memory_space<vmem>>, vector<1x96xf32>
    %4 = vector.broadcast %3 : vector<1x96xf32> to vector<16x96xf32>
    %5 = arith.addf %2, %4 : vector<16x96xf32>
    %c0_5 = arith.constant 0 : index
    %c0_6 = arith.constant 0 : index
    %6 = vector.load %arg5[%c0_5, %c0_6] : memref<16x96xf32, #tpu.memory_space<vmem>>, vector<16x96xf32>
    tpu.vector_store %arg5[%c0_5, %c0_6], %5 {strides = array<i32>} : memref<16x96xf32, #tpu.memory_space<vmem>>, vector<16x96xf32>,
    return
  }
  func.func @transform_0(%arg0: i32, %arg1: i32) -> (i32, i32) {
    %c0_i32 = arith.constant 0 : i32
    %c0_i32_0 = arith.constant 0 : i32
    return %arg1, %c0_i32 : i32, i32
  }
  func.func @transform_1(%arg0: i32, %arg1: i32) -> (i32, i32) {
    %c0_i32 = arith.constant 0 : i32
    %c0_i32_0 = arith.constant 0 : i32
    return %c0_i32, %arg0 : i32, i32
  }
  func.func @transform_2(%arg0: i32, %arg1: i32) -> (i32, i32) {
    %c0_i32 = arith.constant 0 : i32
    %c0_i32_0 = arith.constant 0 : i32
    return %c0_i32, %arg0 : i32, i32
  }
  func.func @transform_3(%arg0: i32, %arg1: i32) -> (i32, i32) {
    %c0_i32 = arith.constant 0 : i32
    return %arg1, %arg0 : i32, i32
  }
}

module attributes {stable_mosaic.version = 11 : i64} {
  func.func @attention_kernel(%arg0: i32, %arg1: i32, %arg2: memref<1x8x96xf32, #tpu.memory_space<vmem>>, %arg3: memref<1x8x96xf32, #tpu.memory_space<vmem>>, %arg4: memref<1x1x8xf32, #tpu.memory_space<vmem>>, %arg5: memref<1x8x32xf32, #tpu.memory_space<vmem>>) attributes {dimension_semantics = [#tpu.dimension_semantics<parallel>, #tpu.dimension_semantics<parallel>], iteration_bounds = array<i64: 2, 1>, scalar_prefetch = 0 : i64, scratch_operands = 0 : i64, tpu.core_type = #tpu.core_type<tc>, window_params = [{transform_indices = @transform_0, window_bounds = array<i64: 1, 8, 96>}, {transform_indices = @transform_1, window_bounds = array<i64: 1, 8, 96>}, {transform_indices = @transform_2, window_bounds = array<i64: 1, 1, 8>}, {transform_indices = @transform_3, window_bounds = array<i64: 1, 8, 32>}]} {
    %c0 = arith.constant 0 : index
    %c0_0 = arith.constant 0 : index
    %c0_1 = arith.constant 0 : index
    %0 = vector.load %arg4[%c0, %c0_0, %c0_1] : memref<1x1x8xf32, #tpu.memory_space<vmem>>, vector<1x1x8xf32>
    %1 = vector.shape_cast %0 : vector<1x1x8xf32> to vector<1x8xf32>
    %cst = arith.constant 0.000000e+00 : f32
    %2 = vector.broadcast %cst : f32 to vector<1x8xf32>
    %3 = arith.cmpf one, %1, %2 : vector<1x8xf32>
    %c0_2 = arith.constant 0 : index
    %c0_3 = arith.constant 0 : index
    %c0_4 = arith.constant 0 : index
    %4 = vector.load %arg2[%c0_2, %c0_3, %c0_4] : memref<1x8x96xf32, #tpu.memory_space<vmem>>, vector<1x8x8xf32>
    %5 = vector.shape_cast %4 : vector<1x8x8xf32> to vector<8x8xf32>
    %cst_5 = arith.constant 0.353553385 : f32
    %6 = vector.broadcast %cst_5 : f32 to vector<8x8xf32>
    %7 = arith.mulf %5, %6 : vector<8x8xf32>
    %c0_6 = arith.constant 0 : index
    %c0_7 = arith.constant 0 : index
    %c32 = arith.constant 32 : index
    %8 = vector.load %arg3[%c0_6, %c0_7, %c32] : memref<1x8x96xf32, #tpu.memory_space<vmem>>, vector<1x8x8xf32>
    %9 = vector.shape_cast %8 : vector<1x8x8xf32> to vector<8x8xf32>
    %c0_8 = arith.constant 0 : index
    %c0_9 = arith.constant 0 : index
    %c64 = arith.constant 64 : index
    %10 = vector.load %arg3[%c0_8, %c0_9, %c64] : memref<1x8x96xf32, #tpu.memory_space<vmem>>, vector<1x8x8xf32>
    %11 = vector.shape_cast %10 : vector<1x8x8xf32> to vector<8x8xf32>
    "tpu.trace_start"() <{level = 10 : i32, message = "qd,kd->qk"}> : () -> ()
    %cst_10 = arith.constant dense<0.000000e+00> : vector<8x8xf32>
    %12 = tpu.matmul %7, %9, %cst_10 {dimension_numbers = #tpu.dot_dimension_numbers<[1], [1], [0], [0], [0, 0, 1, 0], [], []>} : vector<8x8xf32>, vector<8x8xf32>, vector<8x8xf32> -> vector<8x8xf32>
    %cst_11 = arith.constant -1.000000e+09 : f32
    "tpu.trace_stop"() : () -> ()
    %13 = vector.shape_cast %3 : vector<1x8xi1> to vector<1x8xi1>
    %14 = vector.broadcast %13 : vector<1x8xi1> to vector<8x8xi1>
    %15 = vector.broadcast %cst_11 : f32 to vector<8x8xf32>
    %16 = arith.select %14, %12, %15 : vector<8x8xi1>, vector<8x8xf32>
    %cst_12 = arith.constant dense<0xFF800000> : vector<8xf32>
    %17 = vector.multi_reduction <maximumf>, %16, %cst_12 [1] : vector<8x8xf32> to vector<8xf32>
    %18 = vector.shape_cast %17 : vector<8xf32> to vector<8x1xf32>
    %19 = vector.broadcast %18 : vector<8x1xf32> to vector<8x8xf32>
    %20 = arith.subf %16, %19 : vector<8x8xf32>
    %21 = math.exp %20 : vector<8x8xf32>
    %cst_13 = arith.constant dense<0.000000e+00> : vector<8xf32>
    %22 = vector.multi_reduction <add>, %21, %cst_13 [1] : vector<8x8xf32> to vector<8xf32>
    %23 = vector.shape_cast %22 : vector<8xf32> to vector<8x1xf32>
    %cst_14 = arith.constant dense<0.000000e+00> : vector<8x8xf32>
    %24 = tpu.matmul %21, %11, %cst_14 {dimension_numbers = #tpu.dot_dimension_numbers<[1], [0], [0], [1], [0, 0, 1, 1], [], []>} : vector<8x8xf32>, vector<8x8xf32>, vector<8x8xf32> -> vector<8x8xf32>
    %25 = tpu.reciprocal %23 : vector<8x1xf32> -> vector<8x1xf32>
    %26 = vector.broadcast %25 : vector<8x1xf32> to vector<8x8xf32>
    %27 = arith.mulf %24, %26 : vector<8x8xf32>
    %c0_15 = arith.constant 0 : index
    %c0_16 = arith.constant 0 : index
    %c0_17 = arith.constant 0 : index
    %28 = vector.load %arg5[%c0_15, %c0_16, %c0_17] : memref<1x8x32xf32, #tpu.memory_space<vmem>>, vector<1x8x8xf32>
    %29 = vector.shape_cast %28 : vector<1x8x8xf32> to vector<8x8xf32>
    %30 = vector.shape_cast %27 : vector<8x8xf32> to vector<1x8x8xf32>
    tpu.vector_store %arg5[%c0_15, %c0_16, %c0_17], %30 {strides = array<i32>} : memref<1x8x32xf32, #tpu.memory_space<vmem>>, vector<1x8x8xf32>,
    %c0_18 = arith.constant 0 : index
    %c0_19 = arith.constant 0 : index
    %c8 = arith.constant 8 : index
    %31 = vector.load %arg2[%c0_18, %c0_19, %c8] : memref<1x8x96xf32, #tpu.memory_space<vmem>>, vector<1x8x8xf32>
    %32 = vector.shape_cast %31 : vector<1x8x8xf32> to vector<8x8xf32>
    %cst_20 = arith.constant 0.353553385 : f32
    %33 = vector.broadcast %cst_20 : f32 to vector<8x8xf32>
    %34 = arith.mulf %32, %33 : vector<8x8xf32>
    %c0_21 = arith.constant 0 : index
    %c0_22 = arith.constant 0 : index
    %c40 = arith.constant 40 : index
    %35 = vector.load %arg3[%c0_21, %c0_22, %c40] : memref<1x8x96xf32, #tpu.memory_space<vmem>>, vector<1x8x8xf32>
    %36 = vector.shape_cast %35 : vector<1x8x8xf32> to vector<8x8xf32>
    %c0_23 = arith.constant 0 : index
    %c0_24 = arith.constant 0 : index
    %c72 = arith.constant 72 : index
    %37 = vector.load %arg3[%c0_23, %c0_24, %c72] : memref<1x8x96xf32, #tpu.memory_space<vmem>>, vector<1x8x8xf32>
    %38 = vector.shape_cast %37 : vector<1x8x8xf32> to vector<8x8xf32>
    "tpu.trace_start"() <{level = 10 : i32, message = "qd,kd->qk"}> : () -> ()
    %cst_25 = arith.constant dense<0.000000e+00> : vector<8x8xf32>
    %39 = tpu.matmul %34, %36, %cst_25 {dimension_numbers = #tpu.dot_dimension_numbers<[1], [1], [0], [0], [0, 0, 1, 0], [], []>} : vector<8x8xf32>, vector<8x8xf32>, vector<8x8xf32> -> vector<8x8xf32>
    %cst_26 = arith.constant -1.000000e+09 : f32
    "tpu.trace_stop"() : () -> ()
    %40 = vector.shape_cast %3 : vector<1x8xi1> to vector<1x8xi1>
    %41 = vector.broadcast %40 : vector<1x8xi1> to vector<8x8xi1>
    %42 = vector.broadcast %cst_26 : f32 to vector<8x8xf32>
    %43 = arith.select %41, %39, %42 : vector<8x8xi1>, vector<8x8xf32>
    %cst_27 = arith.constant dense<0xFF800000> : vector<8xf32>
    %44 = vector.multi_reduction <maximumf>, %43, %cst_27 [1] : vector<8x8xf32> to vector<8xf32>
    %45 = vector.shape_cast %44 : vector<8xf32> to vector<8x1xf32>
    %46 = vector.broadcast %45 : vector<8x1xf32> to vector<8x8xf32>
    %47 = arith.subf %43, %46 : vector<8x8xf32>
    %48 = math.exp %47 : vector<8x8xf32>
    %cst_28 = arith.constant dense<0.000000e+00> : vector<8xf32>
    %49 = vector.multi_reduction <add>, %48, %cst_28 [1] : vector<8x8xf32> to vector<8xf32>
    %50 = vector.shape_cast %49 : vector<8xf32> to vector<8x1xf32>
    %cst_29 = arith.constant dense<0.000000e+00> : vector<8x8xf32>
    %51 = tpu.matmul %48, %38, %cst_29 {dimension_numbers = #tpu.dot_dimension_numbers<[1], [0], [0], [1], [0, 0, 1, 1], [], []>} : vector<8x8xf32>, vector<8x8xf32>, vector<8x8xf32> -> vector<8x8xf32>
    %52 = tpu.reciprocal %50 : vector<8x1xf32> -> vector<8x1xf32>
    %53 = vector.broadcast %52 : vector<8x1xf32> to vector<8x8xf32>
    %54 = arith.mulf %51, %53 : vector<8x8xf32>
    %c0_30 = arith.constant 0 : index
    %c0_31 = arith.constant 0 : index
    %c8_32 = arith.constant 8 : index
    %55 = vector.load %arg5[%c0_30, %c0_31, %c8_32] : memref<1x8x32xf32, #tpu.memory_space<vmem>>, vector<1x8x8xf32>
    %56 = vector.shape_cast %55 : vector<1x8x8xf32> to vector<8x8xf32>
    %57 = vector.shape_cast %54 : vector<8x8xf32> to vector<1x8x8xf32>
    tpu.vector_store %arg5[%c0_30, %c0_31, %c8_32], %57 {strides = array<i32>} : memref<1x8x32xf32, #tpu.memory_space<vmem>>, vector<1x8x8xf32>,
    %c0_33 = arith.constant 0 : index
    %c0_34 = arith.constant 0 : index
    %c16 = arith.constant 16 : index
    %58 = vector.load %arg2[%c0_33, %c0_34, %c16] : memref<1x8x96xf32, #tpu.memory_space<vmem>>, vector<1x8x8xf32>
    %59 = vector.shape_cast %58 : vector<1x8x8xf32> to vector<8x8xf32>
    %cst_35 = arith.constant 0.353553385 : f32
    %60 = vector.broadcast %cst_35 : f32 to vector<8x8xf32>
    %61 = arith.mulf %59, %60 : vector<8x8xf32>
    %c0_36 = arith.constant 0 : index
    %c0_37 = arith.constant 0 : index
    %c48 = arith.constant 48 : index
    %62 = vector.load %arg3[%c0_36, %c0_37, %c48] : memref<1x8x96xf32, #tpu.memory_space<vmem>>, vector<1x8x8xf32>
    %63 = vector.shape_cast %62 : vector<1x8x8xf32> to vector<8x8xf32>
    %c0_38 = arith.constant 0 : index
    %c0_39 = arith.constant 0 : index
    %c80 = arith.constant 80 : index
    %64 = vector.load %arg3[%c0_38, %c0_39, %c80] : memref<1x8x96xf32, #tpu.memory_space<vmem>>, vector<1x8x8xf32>
    %65 = vector.shape_cast %64 : vector<1x8x8xf32> to vector<8x8xf32>
    "tpu.trace_start"() <{level = 10 : i32, message = "qd,kd->qk"}> : () -> ()
    %cst_40 = arith.constant dense<0.000000e+00> : vector<8x8xf32>
    %66 = tpu.matmul %61, %63, %cst_40 {dimension_numbers = #tpu.dot_dimension_numbers<[1], [1], [0], [0], [0, 0, 1, 0], [], []>} : vector<8x8xf32>, vector<8x8xf32>, vector<8x8xf32> -> vector<8x8xf32>
    %cst_41 = arith.constant -1.000000e+09 : f32
    "tpu.trace_stop"() : () -> ()
    %67 = vector.shape_cast %3 : vector<1x8xi1> to vector<1x8xi1>
    %68 = vector.broadcast %67 : vector<1x8xi1> to vector<8x8xi1>
    %69 = vector.broadcast %cst_41 : f32 to vector<8x8xf32>
    %70 = arith.select %68, %66, %69 : vector<8x8xi1>, vector<8x8xf32>
    %cst_42 = arith.constant dense<0xFF800000> : vector<8xf32>
    %71 = vector.multi_reduction <maximumf>, %70, %cst_42 [1] : vector<8x8xf32> to vector<8xf32>
    %72 = vector.shape_cast %71 : vector<8xf32> to vector<8x1xf32>
    %73 = vector.broadcast %72 : vector<8x1xf32> to vector<8x8xf32>
    %74 = arith.subf %70, %73 : vector<8x8xf32>
    %75 = math.exp %74 : vector<8x8xf32>
    %cst_43 = arith.constant dense<0.000000e+00> : vector<8xf32>
    %76 = vector.multi_reduction <add>, %75, %cst_43 [1] : vector<8x8xf32> to vector<8xf32>
    %77 = vector.shape_cast %76 : vector<8xf32> to vector<8x1xf32>
    %cst_44 = arith.constant dense<0.000000e+00> : vector<8x8xf32>
    %78 = tpu.matmul %75, %65, %cst_44 {dimension_numbers = #tpu.dot_dimension_numbers<[1], [0], [0], [1], [0, 0, 1, 1], [], []>} : vector<8x8xf32>, vector<8x8xf32>, vector<8x8xf32> -> vector<8x8xf32>
    %79 = tpu.reciprocal %77 : vector<8x1xf32> -> vector<8x1xf32>
    %80 = vector.broadcast %79 : vector<8x1xf32> to vector<8x8xf32>
    %81 = arith.mulf %78, %80 : vector<8x8xf32>
    %c0_45 = arith.constant 0 : index
    %c0_46 = arith.constant 0 : index
    %c16_47 = arith.constant 16 : index
    %82 = vector.load %arg5[%c0_45, %c0_46, %c16_47] : memref<1x8x32xf32, #tpu.memory_space<vmem>>, vector<1x8x8xf32>
    %83 = vector.shape_cast %82 : vector<1x8x8xf32> to vector<8x8xf32>
    %84 = vector.shape_cast %81 : vector<8x8xf32> to vector<1x8x8xf32>
    tpu.vector_store %arg5[%c0_45, %c0_46, %c16_47], %84 {strides = array<i32>} : memref<1x8x32xf32, #tpu.memory_space<vmem>>, vector<1x8x8xf32>,
    %c0_48 = arith.constant 0 : index
    %c0_49 = arith.constant 0 : index
    %c24 = arith.constant 24 : index
    %85 = vector.load %arg2[%c0_48, %c0_49, %c24] : memref<1x8x96xf32, #tpu.memory_space<vmem>>, vector<1x8x8xf32>
    %86 = vector.shape_cast %85 : vector<1x8x8xf32> to vector<8x8xf32>
    %cst_50 = arith.constant 0.353553385 : f32
    %87 = vector.broadcast %cst_50 : f32 to vector<8x8xf32>
    %88 = arith.mulf %86, %87 : vector<8x8xf32>
    %c0_51 = arith.constant 0 : index
    %c0_52 = arith.constant 0 : index
    %c56 = arith.constant 56 : index
    %89 = vector.load %arg3[%c0_51, %c0_52, %c56] : memref<1x8x96xf32, #tpu.memory_space<vmem>>, vector<1x8x8xf32>
    %90 = vector.shape_cast %89 : vector<1x8x8xf32> to vector<8x8xf32>
    %c0_53 = arith.constant 0 : index
    %c0_54 = arith.constant 0 : index
    %c88 = arith.constant 88 : index
    %91 = vector.load %arg3[%c0_53, %c0_54, %c88] : memref<1x8x96xf32, #tpu.memory_space<vmem>>, vector<1x8x8xf32>
    %92 = vector.shape_cast %91 : vector<1x8x8xf32> to vector<8x8xf32>
    "tpu.trace_start"() <{level = 10 : i32, message = "qd,kd->qk"}> : () -> ()
    %cst_55 = arith.constant dense<0.000000e+00> : vector<8x8xf32>
    %93 = tpu.matmul %88, %90, %cst_55 {dimension_numbers = #tpu.dot_dimension_numbers<[1], [1], [0], [0], [0, 0, 1, 0], [], []>} : vector<8x8xf32>, vector<8x8xf32>, vector<8x8xf32> -> vector<8x8xf32>
    %cst_56 = arith.constant -1.000000e+09 : f32
    "tpu.trace_stop"() : () -> ()
    %94 = vector.shape_cast %3 : vector<1x8xi1> to vector<1x8xi1>
    %95 = vector.broadcast %94 : vector<1x8xi1> to vector<8x8xi1>
    %96 = vector.broadcast %cst_56 : f32 to vector<8x8xf32>
    %97 = arith.select %95, %93, %96 : vector<8x8xi1>, vector<8x8xf32>
    %cst_57 = arith.constant dense<0xFF800000> : vector<8xf32>
    %98 = vector.multi_reduction <maximumf>, %97, %cst_57 [1] : vector<8x8xf32> to vector<8xf32>
    %99 = vector.shape_cast %98 : vector<8xf32> to vector<8x1xf32>
    %100 = vector.broadcast %99 : vector<8x1xf32> to vector<8x8xf32>
    %101 = arith.subf %97, %100 : vector<8x8xf32>
    %102 = math.exp %101 : vector<8x8xf32>
    %cst_58 = arith.constant dense<0.000000e+00> : vector<8xf32>
    %103 = vector.multi_reduction <add>, %102, %cst_58 [1] : vector<8x8xf32> to vector<8xf32>
    %104 = vector.shape_cast %103 : vector<8xf32> to vector<8x1xf32>
    %cst_59 = arith.constant dense<0.000000e+00> : vector<8x8xf32>
    %105 = tpu.matmul %102, %92, %cst_59 {dimension_numbers = #tpu.dot_dimension_numbers<[1], [0], [0], [1], [0, 0, 1, 1], [], []>} : vector<8x8xf32>, vector<8x8xf32>, vector<8x8xf32> -> vector<8x8xf32>
    %106 = tpu.reciprocal %104 : vector<8x1xf32> -> vector<8x1xf32>
    %107 = vector.broadcast %106 : vector<8x1xf32> to vector<8x8xf32>
    %108 = arith.mulf %105, %107 : vector<8x8xf32>
    %c0_60 = arith.constant 0 : index
    %c0_61 = arith.constant 0 : index
    %c24_62 = arith.constant 24 : index
    %109 = vector.load %arg5[%c0_60, %c0_61, %c24_62] : memref<1x8x32xf32, #tpu.memory_space<vmem>>, vector<1x8x8xf32>
    %110 = vector.shape_cast %109 : vector<1x8x8xf32> to vector<8x8xf32>
    %111 = vector.shape_cast %108 : vector<8x8xf32> to vector<1x8x8xf32>
    tpu.vector_store %arg5[%c0_60, %c0_61, %c24_62], %111 {strides = array<i32>} : memref<1x8x32xf32, #tpu.memory_space<vmem>>, vector<1x8x8xf32>,
    return
  }
  func.func @transform_0(%arg0: i32, %arg1: i32) -> (i32, i32, i32) {
    %c0_i32 = arith.constant 0 : i32
    %c0_i32_0 = arith.constant 0 : i32
    return %arg0, %arg1, %c0_i32 : i32, i32, i32
  }
  func.func @transform_1(%arg0: i32, %arg1: i32) -> (i32, i32, i32) {
    %c0_i32 = arith.constant 0 : i32
    %c0_i32_0 = arith.constant 0 : i32
    %c0_i32_1 = arith.constant 0 : i32
    return %arg0, %c0_i32, %c0_i32_0 : i32, i32, i32
  }
  func.func @transform_2(%arg0: i32, %arg1: i32) -> (i32, i32, i32) {
    %c0_i32 = arith.constant 0 : i32
    %c0_i32_0 = arith.constant 0 : i32
    %c0_i32_1 = arith.constant 0 : i32
    return %arg0, %c0_i32, %c0_i32_0 : i32, i32, i32
  }
  func.func @transform_3(%arg0: i32, %arg1: i32) -> (i32, i32, i32) {
    %c0_i32 = arith.constant 0 : i32
    %c0_i32_0 = arith.constant 0 : i32
    return %arg0, %arg1, %c0_i32 : i32, i32, i32
  }
}

module attributes {stable_mosaic.version = 11 : i64} {
  func.func @linear_kernel(%arg0: i32, %arg1: i32, %arg2: memref<16x32xf32, #tpu.memory_space<vmem>>, %arg3: memref<32x64xf32, #tpu.memory_space<vmem>>, %arg4: memref<1x64xf32, #tpu.memory_space<vmem>>, %arg5: memref<16x64xf32, #tpu.memory_space<vmem>>) attributes {dimension_semantics = [#tpu.dimension_semantics<parallel>, #tpu.dimension_semantics<parallel>], iteration_bounds = array<i64: 1, 1>, scalar_prefetch = 0 : i64, scratch_operands = 0 : i64, tpu.core_type = #tpu.core_type<tc>, window_params = [{transform_indices = @transform_0, window_bounds = array<i64: 16, 32>}, {transform_indices = @transform_1, window_bounds = array<i64: 32, 64>}, {transform_indices = @transform_2, window_bounds = array<i64: 1, 64>}, {transform_indices = @transform_3, window_bounds = array<i64: 16, 64>}]} {
    %c0 = arith.constant 0 : index
    %c0_0 = arith.constant 0 : index
    %0 = vector.load %arg2[%c0, %c0_0] : memref<16x32xf32, #tpu.memory_space<vmem>>, vector<16x32xf32>
    %c0_1 = arith.constant 0 : index
    %c0_2 = arith.constant 0 : index
    %1 = vector.load %arg3[%c0_1, %c0_2] : memref<32x64xf32, #tpu.memory_space<vmem>>, vector<32x64xf32>
    %cst = arith.constant dense<0.000000e+00> : vector<16x64xf32>
    %2 = tpu.matmul %0, %1, %cst {dimension_numbers = #tpu.dot_dimension_numbers<[1], [0], [0], [1], [0, 0, 1, 1], [], []>} : vector<16x32xf32>, vector<32x64xf32>, vector<16x64xf32> -> vector<16x64xf32>
    %c0_3 = arith.constant 0 : index
    %c0_4 = arith.constant 0 : index
    %3 = vector.load %arg4[%c0_3, %c0_4] : memref<1x64xf32, #tpu.memory_space<vmem>>, vector<1x64xf32>
    %4 = vector.broadcast %3 : vector<1x64xf32> to vector<16x64xf32>
    %5 = arith.addf %2, %4 : vector<16x64xf32>
    %c0_5 = arith.constant 0 : index
    %c0_6 = arith.constant 0 : index
    %6 = vector.load %arg5[%c0_5, %c0_6] : memref<16x64xf32, #tpu.memory_space<vmem>>, vector<16x64xf32>
    tpu.vector_store %arg5[%c0_5, %c0_6], %5 {strides = array<i32>} : memref<16x64xf32, #tpu.memory_space<vmem>>, vector<16x64xf32>,
    return
  }
  func.func @transform_0(%arg0: i32, %arg1: i32) -> (i32, i32) {
    %c0_i32 = arith.constant 0 : i32
    %c0_i32_0 = arith.constant 0 : i32
    return %arg1, %c0_i32 : i32, i32
  }
  func.func @transform_1(%arg0: i32, %arg1: i32) -> (i32, i32) {
    %c0_i32 = arith.constant 0 : i32
    %c0_i32_0 = arith.constant 0 : i32
    return %c0_i32, %arg0 : i32, i32
  }
  func.func @transform_2(%arg0: i32, %arg1: i32) -> (i32, i32) {
    %c0_i32 = arith.constant 0 : i32
    %c0_i32_0 = arith.constant 0 : i32
    return %c0_i32, %arg0 : i32, i32
  }
  func.func @transform_3(%arg0: i32, %arg1: i32) -> (i32, i32) {
    %c0_i32 = arith.constant 0 : i32
    return %arg1, %arg0 : i32, i32
  }
}

module attributes {stable_mosaic.version = 11 : i64} {
  func.func @attention_kernel(%arg0: i32, %arg1: i32, %arg2: memref<1x8x32xf32, #tpu.memory_space<vmem>>, %arg3: memref<1x8x64xf32, #tpu.memory_space<vmem>>, %arg4: memref<1x1x8xf32, #tpu.memory_space<vmem>>, %arg5: memref<1x8x32xf32, #tpu.memory_space<vmem>>) attributes {dimension_semantics = [#tpu.dimension_semantics<parallel>, #tpu.dimension_semantics<parallel>], iteration_bounds = array<i64: 2, 1>, scalar_prefetch = 0 : i64, scratch_operands = 0 : i64, tpu.core_type = #tpu.core_type<tc>, window_params = [{transform_indices = @transform_0, window_bounds = array<i64: 1, 8, 32>}, {transform_indices = @transform_1, window_bounds = array<i64: 1, 8, 64>}, {transform_indices = @transform_2, window_bounds = array<i64: 1, 1, 8>}, {transform_indices = @transform_3, window_bounds = array<i64: 1, 8, 32>}]} {
    %c0 = arith.constant 0 : index
    %c0_0 = arith.constant 0 : index
    %c0_1 = arith.constant 0 : index
    %0 = vector.load %arg4[%c0, %c0_0, %c0_1] : memref<1x1x8xf32, #tpu.memory_space<vmem>>, vector<1x1x8xf32>
    %1 = vector.shape_cast %0 : vector<1x1x8xf32> to vector<1x8xf32>
    %cst = arith.constant 0.000000e+00 : f32
    %2 = vector.broadcast %cst : f32 to vector<1x8xf32>
    %3 = arith.cmpf one, %1, %2 : vector<1x8xf32>
    %c0_2 = arith.constant 0 : index
    %c0_3 = arith.constant 0 : index
    %c0_4 = arith.constant 0 : index
    %4 = vector.load %arg2[%c0_2, %c0_3, %c0_4] : memref<1x8x32xf32, #tpu.memory_space<vmem>>, vector<1x8x8xf32>
    %5 = vector.shape_cast %4 : vector<1x8x8xf32> to vector<8x8xf32>
    %cst_5 = arith.constant 0.353553385 : f32
    %6 = vector.broadcast %cst_5 : f32 to vector<8x8xf32>
    %7 = arith.mulf %5, %6 : vector<8x8xf32>
    %c0_6 = arith.constant 0 : index
    %c0_7 = arith.constant 0 : index
    %c0_8 = arith.constant 0 : index
    %8 = vector.load %arg3[%c0_6, %c0_7, %c0_8] : memref<1x8x64xf32, #tpu.memory_space<vmem>>, vector<1x8x8xf32>
    %9 = vector.shape_cast %8 : vector<1x8x8xf32> to vector<8x8xf32>
    %c0_9 = arith.constant 0 : index
    %c0_10 = arith.constant 0 : index
    %c32 = arith.constant 32 : index
    %10 = vector.load %arg3[%c0_9, %c0_10, %c32] : memref<1x8x64xf32, #tpu.memory_space<vmem>>, vector<1x8x8xf32>
    %11 = vector.shape_cast %10 : vector<1x8x8xf32> to vector<8x8xf32>
    "tpu.trace_start"() <{level = 10 : i32, message = "qd,kd->qk"}> : () -> ()
    %cst_11 = arith.constant dense<0.000000e+00> : vector<8x8xf32>
    %12 = tpu.matmul %7, %9, %cst_11 {dimension_numbers = #tpu.dot_dimension_numbers<[1], [1], [0], [0], [0, 0, 1, 0], [], []>} : vector<8x8xf32>, vector<8x8xf32>, vector<8x8xf32> -> vector<8x8xf32>
    %cst_12 = arith.constant -1.000000e+09 : f32
    "tpu.trace_stop"() : () -> ()
    %13 = vector.shape_cast %3 : vector<1x8xi1> to vector<1x8xi1>
    %14 = vector.broadcast %13 : vector<1x8xi1> to vector<8x8xi1>
    %15 = vector.broadcast %cst_12 : f32 to vector<8x8xf32>
    %16 = arith.select %14, %12, %15 : vector<8x8xi1>, vector<8x8xf32>
    %cst_13 = arith.constant dense<0xFF800000> : vector<8xf32>
    %17 = vector.multi_reduction <maximumf>, %16, %cst_13 [1] : vector<8x8xf32> to vector<8xf32>
    %18 = vector.shape_cast %17 : vector<8xf32> to vector<8x1xf32>
    %19 = vector.broadcast %18 : vector<8x1xf32> to vector<8x8xf32>
    %20 = arith.subf %16, %19 : vector<8x8xf32>
    %21 = math.exp %20 : vector<8x8xf32>
    %cst_14 = arith.constant dense<0.000000e+00> : vector<8xf32>
    %22 = vector.multi_reduction <add>, %21, %cst_14 [1] : vector<8x8xf32> to vector<8xf32>
    %23 = vector.shape_cast %22 : vector<8xf32> to vector<8x1xf32>
    %cst_15 = arith.constant dense<0.000000e+00> : vector<8x8xf32>
    %24 = tpu.matmul %21, %11, %cst_15 {dimension_numbers = #tpu.dot_dimension_numbers<[1], [0], [0], [1], [0, 0, 1, 1], [], []>} : vector<8x8xf32>, vector<8x8xf32>, vector<8x8xf32> -> vector<8x8xf32>
    %25 = tpu.reciprocal %23 : vector<8x1xf32> -> vector<8x1xf32>
    %26 = vector.broadcast %25 : vector<8x1xf32> to vector<8x8xf32>
    %27 = arith.mulf %24, %26 : vector<8x8xf32>
    %c0_16 = arith.constant 0 : index
    %c0_17 = arith.constant 0 : index
    %c0_18 = arith.constant 0 : index
    %28 = vector.load %arg5[%c0_16, %c0_17, %c0_18] : memref<1x8x32xf32, #tpu.memory_space<vmem>>, vector<1x8x8xf32>
    %29 = vector.shape_cast %28 : vector<1x8x8xf32> to vector<8x8xf32>
    %30 = vector.shape_cast %27 : vector<8x8xf32> to vector<1x8x8xf32>
    tpu.vector_store %arg5[%c0_16, %c0_17, %c0_18], %30 {strides = array<i32>} : memref<1x8x32xf32, #tpu.memory_space<vmem>>, vector<1x8x8xf32>,
    %c0_19 = arith.constant 0 : index
    %c0_20 = arith.constant 0 : index
    %c8 = arith.constant 8 : index
    %31 = vector.load %arg2[%c0_19, %c0_20, %c8] : memref<1x8x32xf32, #tpu.memory_space<vmem>>, vector<1x8x8xf32>
    %32 = vector.shape_cast %31 : vector<1x8x8xf32> to vector<8x8xf32>
    %cst_21 = arith.constant 0.353553385 : f32
    %33 = vector.broadcast %cst_21 : f32 to vector<8x8xf32>
    %34 = arith.mulf %32, %33 : vector<8x8xf32>
    %c0_22 = arith.constant 0 : index
    %c0_23 = arith.constant 0 : index
    %c8_24 = arith.constant 8 : index
    %35 = vector.load %arg3[%c0_22, %c0_23, %c8_24] : memref<1x8x64xf32, #tpu.memory_space<vmem>>, vector<1x8x8xf32>
    %36 = vector.shape_cast %35 : vector<1x8x8xf32> to vector<8x8xf32>
    %c0_25 = arith.constant 0 : index
    %c0_26 = arith.constant 0 : index
    %c40 = arith.constant 40 : index
    %37 = vector.load %arg3[%c0_25, %c0_26, %c40] : memref<1x8x64xf32, #tpu.memory_space<vmem>>, vector<1x8x8xf32>
    %38 = vector.shape_cast %37 : vector<1x8x8xf32> to vector<8x8xf32>
    "tpu.trace_start"() <{level = 10 : i32, message = "qd,kd->qk"}> : () -> ()
    %cst_27 = arith.constant dense<0.000000e+00> : vector<8x8xf32>
    %39 = tpu.matmul %34, %36, %cst_27 {dimension_numbers = #tpu.dot_dimension_numbers<[1], [1], [0], [0], [0, 0, 1, 0], [], []>} : vector<8x8xf32>, vector<8x8xf32>, vector<8x8xf32> -> vector<8x8xf32>
    %cst_28 = arith.constant -1.000000e+09 : f32
    "tpu.trace_stop"() : () -> ()
    %40 = vector.shape_cast %3 : vector<1x8xi1> to vector<1x8xi1>
    %41 = vector.broadcast %40 : vector<1x8xi1> to vector<8x8xi1>
    %42 = vector.broadcast %cst_28 : f32 to vector<8x8xf32>
    %43 = arith.select %41, %39, %42 : vector<8x8xi1>, vector<8x8xf32>
    %cst_29 = arith.constant dense<0xFF800000> : vector<8xf32>
    %44 = vector.multi_reduction <maximumf>, %43, %cst_29 [1] : vector<8x8xf32> to vector<8xf32>
    %45 = vector.shape_cast %44 : vector<8xf32> to vector<8x1xf32>
    %46 = vector.broadcast %45 : vector<8x1xf32> to vector<8x8xf32>
    %47 = arith.subf %43, %46 : vector<8x8xf32>
    %48 = math.exp %47 : vector<8x8xf32>
    %cst_30 = arith.constant dense<0.000000e+00> : vector<8xf32>
    %49 = vector.multi_reduction <add>, %48, %cst_30 [1] : vector<8x8xf32> to vector<8xf32>
    %50 = vector.shape_cast %49 : vector<8xf32> to vector<8x1xf32>
    %cst_31 = arith.constant dense<0.000000e+00> : vector<8x8xf32>
    %51 = tpu.matmul %48, %38, %cst_31 {dimension_numbers = #tpu.dot_dimension_numbers<[1], [0], [0], [1], [0, 0, 1, 1], [], []>} : vector<8x8xf32>, vector<8x8xf32>, vector<8x8xf32> -> vector<8x8xf32>
    %52 = tpu.reciprocal %50 : vector<8x1xf32> -> vector<8x1xf32>
    %53 = vector.broadcast %52 : vector<8x1xf32> to vector<8x8xf32>
    %54 = arith.mulf %51, %53 : vector<8x8xf32>
    %c0_32 = arith.constant 0 : index
    %c0_33 = arith.constant 0 : index
    %c8_34 = arith.constant 8 : index
    %55 = vector.load %arg5[%c0_32, %c0_33, %c8_34] : memref<1x8x32xf32, #tpu.memory_space<vmem>>, vector<1x8x8xf32>
    %56 = vector.shape_cast %55 : vector<1x8x8xf32> to vector<8x8xf32>
    %57 = vector.shape_cast %54 : vector<8x8xf32> to vector<1x8x8xf32>
    tpu.vector_store %arg5[%c0_32, %c0_33, %c8_34], %57 {strides = array<i32>} : memref<1x8x32xf32, #tpu.memory_space<vmem>>, vector<1x8x8xf32>,
    %c0_35 = arith.constant 0 : index
    %c0_36 = arith.constant 0 : index
    %c16 = arith.constant 16 : index
    %58 = vector.load %arg2[%c0_35, %c0_36, %c16] : memref<1x8x32xf32, #tpu.memory_space<vmem>>, vector<1x8x8xf32>
    %59 = vector.shape_cast %58 : vector<1x8x8xf32> to vector<8x8xf32>
    %cst_37 = arith.constant 0.353553385 : f32
    %60 = vector.broadcast %cst_37 : f32 to vector<8x8xf32>
    %61 = arith.mulf %59, %60 : vector<8x8xf32>
    %c0_38 = arith.constant 0 : index
    %c0_39 = arith.constant 0 : index
    %c16_40 = arith.constant 16 : index
    %62 = vector.load %arg3[%c0_38, %c0_39, %c16_40] : memref<1x8x64xf32, #tpu.memory_space<vmem>>, vector<1x8x8xf32>
    %63 = vector.shape_cast %62 : vector<1x8x8xf32> to vector<8x8xf32>
    %c0_41 = arith.constant 0 : index
    %c0_42 = arith.constant 0 : index
    %c48 = arith.constant 48 : index
    %64 = vector.load %arg3[%c0_41, %c0_42, %c48] : memref<1x8x64xf32, #tpu.memory_space<vmem>>, vector<1x8x8xf32>
    %65 = vector.shape_cast %64 : vector<1x8x8xf32> to vector<8x8xf32>
    "tpu.trace_start"() <{level = 10 : i32, message = "qd,kd->qk"}> : () -> ()
    %cst_43 = arith.constant dense<0.000000e+00> : vector<8x8xf32>
    %66 = tpu.matmul %61, %63, %cst_43 {dimension_numbers = #tpu.dot_dimension_numbers<[1], [1], [0], [0], [0, 0, 1, 0], [], []>} : vector<8x8xf32>, vector<8x8xf32>, vector<8x8xf32> -> vector<8x8xf32>
    %cst_44 = arith.constant -1.000000e+09 : f32
    "tpu.trace_stop"() : () -> ()
    %67 = vector.shape_cast %3 : vector<1x8xi1> to vector<1x8xi1>
    %68 = vector.broadcast %67 : vector<1x8xi1> to vector<8x8xi1>
    %69 = vector.broadcast %cst_44 : f32 to vector<8x8xf32>
    %70 = arith.select %68, %66, %69 : vector<8x8xi1>, vector<8x8xf32>
    %cst_45 = arith.constant dense<0xFF800000> : vector<8xf32>
    %71 = vector.multi_reduction <maximumf>, %70, %cst_45 [1] : vector<8x8xf32> to vector<8xf32>
    %72 = vector.shape_cast %71 : vector<8xf32> to vector<8x1xf32>
    %73 = vector.broadcast %72 : vector<8x1xf32> to vector<8x8xf32>
    %74 = arith.subf %70, %73 : vector<8x8xf32>
    %75 = math.exp %74 : vector<8x8xf32>
    %cst_46 = arith.constant dense<0.000000e+00> : vector<8xf32>
    %76 = vector.multi_reduction <add>, %75, %cst_46 [1] : vector<8x8xf32> to vector<8xf32>
    %77 = vector.shape_cast %76 : vector<8xf32> to vector<8x1xf32>
    %cst_47 = arith.constant dense<0.000000e+00> : vector<8x8xf32>
    %78 = tpu.matmul %75, %65, %cst_47 {dimension_numbers = #tpu.dot_dimension_numbers<[1], [0], [0], [1], [0, 0, 1, 1], [], []>} : vector<8x8xf32>, vector<8x8xf32>, vector<8x8xf32> -> vector<8x8xf32>
    %79 = tpu.reciprocal %77 : vector<8x1xf32> -> vector<8x1xf32>
    %80 = vector.broadcast %79 : vector<8x1xf32> to vector<8x8xf32>
    %81 = arith.mulf %78, %80 : vector<8x8xf32>
    %c0_48 = arith.constant 0 : index
    %c0_49 = arith.constant 0 : index
    %c16_50 = arith.constant 16 : index
    %82 = vector.load %arg5[%c0_48, %c0_49, %c16_50] : memref<1x8x32xf32, #tpu.memory_space<vmem>>, vector<1x8x8xf32>
    %83 = vector.shape_cast %82 : vector<1x8x8xf32> to vector<8x8xf32>
    %84 = vector.shape_cast %81 : vector<8x8xf32> to vector<1x8x8xf32>
    tpu.vector_store %arg5[%c0_48, %c0_49, %c16_50], %84 {strides = array<i32>} : memref<1x8x32xf32, #tpu.memory_space<vmem>>, vector<1x8x8xf32>,
    %c0_51 = arith.constant 0 : index
    %c0_52 = arith.constant 0 : index
    %c24 = arith.constant 24 : index
    %85 = vector.load %arg2[%c0_51, %c0_52, %c24] : memref<1x8x32xf32, #tpu.memory_space<vmem>>, vector<1x8x8xf32>
    %86 = vector.shape_cast %85 : vector<1x8x8xf32> to vector<8x8xf32>
    %cst_53 = arith.constant 0.353553385 : f32
    %87 = vector.broadcast %cst_53 : f32 to vector<8x8xf32>
    %88 = arith.mulf %86, %87 : vector<8x8xf32>
    %c0_54 = arith.constant 0 : index
    %c0_55 = arith.constant 0 : index
    %c24_56 = arith.constant 24 : index
    %89 = vector.load %arg3[%c0_54, %c0_55, %c24_56] : memref<1x8x64xf32, #tpu.memory_space<vmem>>, vector<1x8x8xf32>
    %90 = vector.shape_cast %89 : vector<1x8x8xf32> to vector<8x8xf32>
    %c0_57 = arith.constant 0 : index
    %c0_58 = arith.constant 0 : index
    %c56 = arith.constant 56 : index
    %91 = vector.load %arg3[%c0_57, %c0_58, %c56] : memref<1x8x64xf32, #tpu.memory_space<vmem>>, vector<1x8x8xf32>
    %92 = vector.shape_cast %91 : vector<1x8x8xf32> to vector<8x8xf32>
    "tpu.trace_start"() <{level = 10 : i32, message = "qd,kd->qk"}> : () -> ()
    %cst_59 = arith.constant dense<0.000000e+00> : vector<8x8xf32>
    %93 = tpu.matmul %88, %90, %cst_59 {dimension_numbers = #tpu.dot_dimension_numbers<[1], [1], [0], [0], [0, 0, 1, 0], [], []>} : vector<8x8xf32>, vector<8x8xf32>, vector<8x8xf32> -> vector<8x8xf32>
    %cst_60 = arith.constant -1.000000e+09 : f32
    "tpu.trace_stop"() : () -> ()
    %94 = vector.shape_cast %3 : vector<1x8xi1> to vector<1x8xi1>
    %95 = vector.broadcast %94 : vector<1x8xi1> to vector<8x8xi1>
    %96 = vector.broadcast %cst_60 : f32 to vector<8x8xf32>
    %97 = arith.select %95, %93, %96 : vector<8x8xi1>, vector<8x8xf32>
    %cst_61 = arith.constant dense<0xFF800000> : vector<8xf32>
    %98 = vector.multi_reduction <maximumf>, %97, %cst_61 [1] : vector<8x8xf32> to vector<8xf32>
    %99 = vector.shape_cast %98 : vector<8xf32> to vector<8x1xf32>
    %100 = vector.broadcast %99 : vector<8x1xf32> to vector<8x8xf32>
    %101 = arith.subf %97, %100 : vector<8x8xf32>
    %102 = math.exp %101 : vector<8x8xf32>
    %cst_62 = arith.constant dense<0.000000e+00> : vector<8xf32>
    %103 = vector.multi_reduction <add>, %102, %cst_62 [1] : vector<8x8xf32> to vector<8xf32>
    %104 = vector.shape_cast %103 : vector<8xf32> to vector<8x1xf32>
    %cst_63 = arith.constant dense<0.000000e+00> : vector<8x8xf32>
    %105 = tpu.matmul %102, %92, %cst_63 {dimension_numbers = #tpu.dot_dimension_numbers<[1], [0], [0], [1], [0, 0, 1, 1], [], []>} : vector<8x8xf32>, vector<8x8xf32>, vector<8x8xf32> -> vector<8x8xf32>
    %106 = tpu.reciprocal %104 : vector<8x1xf32> -> vector<8x1xf32>
    %107 = vector.broadcast %106 : vector<8x1xf32> to vector<8x8xf32>
    %108 = arith.mulf %105, %107 : vector<8x8xf32>
    %c0_64 = arith.constant 0 : index
    %c0_65 = arith.constant 0 : index
    %c24_66 = arith.constant 24 : index
    %109 = vector.load %arg5[%c0_64, %c0_65, %c24_66] : memref<1x8x32xf32, #tpu.memory_space<vmem>>, vector<1x8x8xf32>
    %110 = vector.shape_cast %109 : vector<1x8x8xf32> to vector<8x8xf32>
    %111 = vector.shape_cast %108 : vector<8x8xf32> to vector<1x8x8xf32>
    tpu.vector_store %arg5[%c0_64, %c0_65, %c24_66], %111 {strides = array<i32>} : memref<1x8x32xf32, #tpu.memory_space<vmem>>, vector<1x8x8xf32>,
    return
  }
  func.func @transform_0(%arg0: i32, %arg1: i32) -> (i32, i32, i32) {
    %c0_i32 = arith.constant 0 : i32
    %c0_i32_0 = arith.constant 0 : i32
    return %arg0, %arg1, %c0_i32 : i32, i32, i32
  }
  func.func @transform_1(%arg0: i32, %arg1: i32) -> (i32, i32, i32) {
    %c0_i32 = arith.constant 0 : i32
    %c0_i32_0 = arith.constant 0 : i32
    %c0_i32_1 = arith.constant 0 : i32
    return %arg0, %c0_i32, %c0_i32_0 : i32, i32, i32
  }
  func.func @transform_2(%arg0: i32, %arg1: i32) -> (i32, i32, i32) {
    %c0_i32 = arith.constant 0 : i32
    %c0_i32_0 = arith.constant 0 : i32
    %c0_i32_1 = arith.constant 0 : i32
    return %arg0, %c0_i32, %c0_i32_0 : i32, i32, i32
  }
  func.func @transform_3(%arg0: i32, %arg1: i32) -> (i32, i32, i32) {
    %c0_i32 = arith.constant 0 : i32
    %c0_i32_0 = arith.constant 0 : i32
    return %arg0, %arg1, %c0_i32 : i32, i32, i32
  }
}

module attributes {stable_mosaic.version = 11 : i64} {
  func.func @ffn_residual_norm_kernel(%arg0: i32, %arg1: i32, %arg2: memref<16x32xf32, #tpu.memory_space<vmem>>, %arg3: memref<32x64xf32, #tpu.memory_space<vmem>>, %arg4: memref<1x64xf32, #tpu.memory_space<vmem>>, %arg5: memref<64x32xf32, #tpu.memory_space<vmem>>, %arg6: memref<1x32xf32, #tpu.memory_space<vmem>>, %arg7: memref<1x32xf32, #tpu.memory_space<vmem>>, %arg8: memref<1x32xf32, #tpu.memory_space<vmem>>, %arg9: memref<16x32xf32, #tpu.memory_space<vmem>>, %arg10: memref<16x32xf32, #tpu.memory_space<vmem>>) attributes {dimension_semantics = [#tpu.dimension_semantics<parallel>, #tpu.dimension_semantics<arbitrary>], iteration_bounds = array<i64: 1, 1>, scalar_prefetch = 0 : i64, scratch_operands = 1 : i64, tpu.core_type = #tpu.core_type<tc>, window_params = [{transform_indices = @transform_0, window_bounds = array<i64: 16, 32>}, {transform_indices = @transform_1, window_bounds = array<i64: 32, 64>}, {transform_indices = @transform_2, window_bounds = array<i64: 1, 64>}, {transform_indices = @transform_3, window_bounds = array<i64: 64, 32>}, {pipeline_mode = #tpu.pipeline_mode<synchronous>, transform_indices = @transform_4, window_bounds = array<i64: 1, 32>}, {pipeline_mode = #tpu.pipeline_mode<synchronous>, transform_indices = @transform_5, window_bounds = array<i64: 1, 32>}, {pipeline_mode = #tpu.pipeline_mode<synchronous>, transform_indices = @transform_6, window_bounds = array<i64: 1, 32>}, {transform_indices = @transform_7, window_bounds = array<i64: 16, 32>}]} {
    %c0_i32 = arith.constant 0 : i32
    %0 = arith.cmpi eq, %arg1, %c0_i32 : i32
    %1 = arith.extui %0 : i1 to i32
    %c0_i32_0 = arith.constant 0 : i32
    %2 = arith.cmpi ne, %1, %c0_i32_0 : i32
    scf.if %2 {
      %cst_16 = arith.constant 0.000000e+00 : f32
      %19 = vector.broadcast %cst_16 : f32 to vector<16x32xf32>
      %c0_17 = arith.constant 0 : index
      %c0_18 = arith.constant 0 : index
      %20 = vector.load %arg10[%c0_17, %c0_18] : memref<16x32xf32, #tpu.memory_space<vmem>>, vector<16x32xf32>
      tpu.vector_store %arg10[%c0_17, %c0_18], %19 {strides = array<i32>} : memref<16x32xf32, #tpu.memory_space<vmem>>, vector<16x32xf32>,
    } else {
    }
    %c0 = arith.constant 0 : index
    %c0_1 = arith.constant 0 : index
    %3 = vector.load %arg2[%c0, %c0_1] : memref<16x32xf32, #tpu.memory_space<vmem>>, vector<16x32xf32>
    %c0_2 = arith.constant 0 : index
    %c0_3 = arith.constant 0 : index
    %4 = vector.load %arg3[%c0_2, %c0_3] : memref<32x64xf32, #tpu.memory_space<vmem>>, vector<32x64xf32>
    %cst = arith.constant dense<0.000000e+00> : vector<16x64xf32>
    %5 = tpu.matmul %3, %4, %cst {dimension_numbers = #tpu.dot_dimension_numbers<[1], [0], [0], [1], [0, 0, 1, 1], [], []>} : vector<16x32xf32>, vector<32x64xf32>, vector<16x64xf32> -> vector<16x64xf32>
    %c0_4 = arith.constant 0 : index
    %c0_5 = arith.constant 0 : index
    %6 = vector.load %arg4[%c0_4, %c0_5] : memref<1x64xf32, #tpu.memory_space<vmem>>, vector<1x64xf32>
    %7 = vector.broadcast %6 : vector<1x64xf32> to vector<16x64xf32>
    %8 = arith.addf %5, %7 : vector<16x64xf32>
    %cst_6 = arith.constant 0.000000e+00 : f32
    %9 = vector.broadcast %cst_6 : f32 to vector<16x64xf32>
    %10 = arith.maximumf %8, %9 : vector<16x64xf32>
    %c0_7 = arith.constant 0 : index
    %c0_8 = arith.constant 0 : index
    %11 = vector.load %arg10[%c0_7, %c0_8] : memref<16x32xf32, #tpu.memory_space<vmem>>, vector<16x32xf32>
    %c0_9 = arith.constant 0 : index
    %c0_10 = arith.constant 0 : index
    %12 = vector.load %arg5[%c0_9, %c0_10] : memref<64x32xf32, #tpu.memory_space<vmem>>, vector<64x32xf32>
    %cst_11 = arith.constant dense<0.000000e+00> : vector<16x32xf32>
    %13 = tpu.matmul %10, %12, %cst_11 {dimension_numbers = #tpu.dot_dimension_numbers<[1], [0], [0], [1], [0, 0, 1, 1], [], []>} : vector<16x64xf32>, vector<64x32xf32>, vector<16x32xf32> -> vector<16x32xf32>
    %14 = arith.addf %11, %13 : vector<16x32xf32>
    %c0_12 = arith.constant 0 : index
    %c0_13 = arith.constant 0 : index
    %15 = vector.load %arg10[%c0_12, %c0_13] : memref<16x32xf32, #tpu.memory_space<vmem>>, vector<16x32xf32>
    tpu.vector_store %arg10[%c0_12, %c0_13], %14 {strides = array<i32>} : memref<16x32xf32, #tpu.memory_space<vmem>>, vector<16x32xf32>,
    %c0_i32_14 = arith.constant 0 : i32
    %16 = arith.cmpi eq, %arg1, %c0_i32_14 : i32
    %17 = arith.extui %16 : i1 to i32
    %c0_i32_15 = arith.constant 0 : i32
    %18 = arith.cmpi ne, %17, %c0_i32_15 : i32
    scf.if %18 {
      %c0_16 = arith.constant 0 : index
      %c0_17 = arith.constant 0 : index
      %19 = vector.load %arg10[%c0_16, %c0_17] : memref<16x32xf32, #tpu.memory_space<vmem>>, vector<16x32xf32>
      %c0_18 = arith.constant 0 : index
      %c0_19 = arith.constant 0 : index
      %20 = vector.load %arg6[%c0_18, %c0_19] : memref<1x32xf32, #tpu.memory_space<vmem>>, vector<1x32xf32>
      %21 = vector.broadcast %20 : vector<1x32xf32> to vector<16x32xf32>
      %22 = arith.addf %19, %21 : vector<16x32xf32>
      %c0_20 = arith.constant 0 : index
      %c0_21 = arith.constant 0 : index
      %23 = vector.load %arg2[%c0_20, %c0_21] : memref<16x32xf32, #tpu.memory_space<vmem>>, vector<16x32xf32>
      %24 = arith.addf %22, %23 : vector<16x32xf32>
      %cst_22 = arith.constant dense<0.000000e+00> : vector<16xf32>
      %25 = vector.multi_reduction <add>, %24, %cst_22 [1] : vector<16x32xf32> to vector<16xf32>
      %26 = vector.shape_cast %25 : vector<16xf32> to vector<16x1xf32>
      %cst_23 = arith.constant 3.200000e+01 : f32
      %27 = vector.broadcast %cst_23 : f32 to vector<16x1xf32>
      %28 = arith.divf %26, %27 : vector<16x1xf32>
      %29 = vector.broadcast %28 : vector<16x1xf32> to vector<16x32xf32>
      %30 = arith.subf %24, %29 : vector<16x32xf32>
      %31 = arith.mulf %30, %30 : vector<16x32xf32>
      %cst_24 = arith.constant dense<0.000000e+00> : vector<16xf32>
      %32 = vector.multi_reduction <add>, %31, %cst_24 [1] : vector<16x32xf32> to vector<16xf32>
      %33 = vector.shape_cast %32 : vector<16xf32> to vector<16x1xf32>
      %cst_25 = arith.constant 0.0322580636 : f32
      %34 = vector.broadcast %cst_25 : f32 to vector<16x1xf32>
      %35 = arith.mulf %33, %34 : vector<16x1xf32>
      %36 = math.sqrt %35 : vector<16x1xf32>
      %cst_26 = arith.constant 9.99999997E-7 : f32
      %37 = vector.broadcast %cst_26 : f32 to vector<16x1xf32>
      %38 = arith.addf %36, %37 : vector<16x1xf32>
      %39 = tpu.reciprocal %38 : vector<16x1xf32> -> vector<16x1xf32>
      %c0_27 = arith.constant 0 : index
      %c0_28 = arith.constant 0 : index
      %40 = vector.load %arg7[%c0_27, %c0_28] : memref<1x32xf32, #tpu.memory_space<vmem>>, vector<1x32xf32>
      %41 = vector.broadcast %40 : vector<1x32xf32> to vector<16x32xf32>
      %42 = arith.mulf %41, %30 : vector<16x32xf32>
      %43 = vector.broadcast %39 : vector<16x1xf32> to vector<16x32xf32>
      %44 = arith.mulf %42, %43 : vector<16x32xf32>
      %c0_29 = arith.constant 0 : index
      %c0_30 = arith.constant 0 : index
      %45 = vector.load %arg8[%c0_29, %c0_30] : memref<1x32xf32, #tpu.memory_space<vmem>>, vector<1x32xf32>
      %46 = vector.broadcast %45 : vector<1x32xf32> to vector<16x32xf32>
      %47 = arith.addf %44, %46 : vector<16x32xf32>
      %c0_31 = arith.constant 0 : index
      %c0_32 = arith.constant 0 : index
      %48 = vector.load %arg9[%c0_31, %c0_32] : memref<16x32xf32, #tpu.memory_space<vmem>>, vector<16x32xf32>
      tpu.vector_store %arg9[%c0_31, %c0_32], %47 {strides = array<i32>} : memref<16x32xf32, #tpu.memory_space<vmem>>, vector<16x32xf32>,
    } else {
    }
    return
  }
  func.func @transform_0(%arg0: i32, %arg1: i32) -> (i32, i32) {
    %c0_i32 = arith.constant 0 : i32
    %c0_i32_0 = arith.constant 0 : i32
    return %arg0, %c0_i32 : i32, i32
  }
  func.func @transform_1(%arg0: i32, %arg1: i32) -> (i32, i32) {
    %c0_i32 = arith.constant 0 : i32
    %c0_i32_0 = arith.constant 0 : i32
    return %c0_i32, %arg1 : i32, i32
  }
  func.func @transform_2(%arg0: i32, %arg1: i32) -> (i32, i32) {
    %c0_i32 = arith.constant 0 : i32
    %c0_i32_0 = arith.constant 0 : i32
    return %c0_i32, %arg1 : i32, i32
  }
  func.func @transform_3(%arg0: i32, %arg1: i32) -> (i32, i32) {
    %c0_i32 = arith.constant 0 : i32
    %c0_i32_0 = arith.constant 0 : i32
    return %arg1, %c0_i32 : i32, i32
  }
  func.func @transform_4(%arg0: i32, %arg1: i32) -> (i32, i32) {
    %c0_i32 = arith.constant 0 : i32
    %c0_i32_0 = arith.constant 0 : i32
    %c0_i32_1 = arith.constant 0 : i32
    return %c0_i32, %c0_i32_0 : i32, i32
  }
  func.func @transform_5(%arg0: i32, %arg1: i32) -> (i32, i32) {
    %c0_i32 = arith.constant 0 : i32
    %c0_i32_0 = arith.constant 0 : i32
    %c0_i32_1 = arith.constant 0 : i32
    return %c0_i32, %c0_i32_0 : i32, i32
  }
  func.func @transform_6(%arg0: i32, %arg1: i32) -> (i32, i32) {
    %c0_i32 = arith.constant 0 : i32
    %c0_i32_0 = arith.constant 0 : i32
    %c0_i32_1 = arith.constant 0 : i32
    return %c0_i32, %c0_i32_0 : i32, i32
  }
  func.func @transform_7(%arg0: i32, %arg1: i32) -> (i32, i32) {
    %c0_i32 = arith.constant 0 : i32
    %c0_i32_0 = arith.constant 0 : i32
    return %arg0, %c0_i32 : i32, i32
  }
}

</mosaic_0001>

<bundles_post_ra>
// kernel: decoder_layer.10
= control target key start
LH: loop header
LB: loop body
LE: loop exit
PB: predicated region body
PF: predicated region fallthrough
CT: control target
= control target key end

     0   :  { %vm27_vm0 = vcmask 261120   ;;  %v246_v3 = vmov 0.0   ;;  %s333_s1 = inlined_call_operand.vmem [shape: f32[32,32], index: 1, kind: input, shape index: {}]   ;;  %s334_s0 = inlined_call_operand.vmem [shape: f32[16,32], index: 0, kind: input, shape index: {}]   ;;  %s335_s2 = inlined_call_operand.vmem [shape: f32[1,32], index: 2, kind: input, shape index: {}]   ;;  %s336_s3 = inlined_call_operand.vmem [shape: f32[16,32], index: 3, kind: input, shape index: {}]   ;;  %s337_s4 = inlined_call_operand.vmem [shape: f32[1,32], index: 4, kind: input, shape index: {}]   ;;  %s338_s5 = inlined_call_operand.vmem [shape: f32[1,32], index: 5, kind: input, shape index: {}]   ;;  %s339_s6 = inlined_call_operand.vmem [shape: f32[16,32], index: 6, kind: output, shape index: {}]  }
   0x1   :  { %v34_v0 = vld [vmem:[%s333_s1] sm:$0xff]  ;;  %v35_v1 = vld [vmem:[%s333_s1 + $0x8] sm:$0xff]  ;;  %v36_v2 = vld [vmem:[%s333_s1 + $0x10] sm:$0xff]  ;;  %29 = vst.msk [vmem:[#allocation2 + $0x8] sm:$0xff] %vm27_vm0, %v246_v3 }
   0x2   :  { %28 = vst.msk [vmem:[#allocation2] sm:$0xff] %vm27_vm0, %v246_v3  ;;  %v229_v4 = vpack.c.bf16 %v35_v1, %v34_v0  ;;  %v37_v5 = vld [vmem:[%s333_s1 + $0x18] sm:$0xff]  ;;  %v32_v6 = vld [vmem:[%s334_s0] sm:$0xff]  ;;  %v33_v8 = vld [vmem:[%s334_s0 + $0x8] sm:$0xff] }
   0x3   :  { %v233_v7 = vpack.c.bf16 %v37_v5, %v36_v2  ;;  %226 = vmatprep.mubr.msk.f32.mxu0 %vm27_vm0, %v32_v6  ;;  %v209_v15 = vld [vmem:[%s335_s2] ss:$0 sm:$0xff]  ;;  %v139_v21 = vld [vmem:[%s336_s3 + $0x8] sm:$0xff] }
   0x4   :  { %230 = vmatprep.subr.bf16.mxu0 %v229_v4  ;;  %v138_v18 = vld [vmem:[%s336_s3] sm:$0xff] }
   0x5   :  { %232 = vmatpush3.bf16.msra.mxu0 %v229_v4  ;;  %v210_v52 = vld [vmem:[%s337_s4] ss:$0 sm:$0xff] }
   0x6   :  { %234 = vmatprep.subr.bf16.mxu0 %v233_v7  ;;  %v211_v55 = vld [vmem:[%s338_s5] ss:$0 sm:$0xff] }
   0x8   :  { %v31_v9 = vld [vmem:[#allocation2 + $0x8] sm:$0xff] }
   0x9   :  { %236 = vmatpush3.bf16.msra.mxu0 %v233_v7  ;;  %v30_v10 = vld [vmem:[#allocation2] sm:$0xff] }
   0xc   :  { %227 = vmatmul.mubr.msk.f32.vlgmr.msra.gmra.mrb[0].mxu0 %vm27_vm0, %v33_v8 }
  0xdf   :  { %v228_v11 = vpop.f32.mrb[0].mxu0 }
  0xe0   :  { %v121_v12 = vadd.f32 %v228_v11, %v31_v9  ;;  %v111_v13 = vpop.f32.mrb[1].mxu0 }
  0xe1   :  { %v120_v14 = vadd.f32 %v111_v13, %v30_v10 }
  0xe2   :  { %123 = vst.msk [vmem:[#allocation2 + $0x8] sm:$0xff] %vm27_vm0, %v121_v12 }
  0xe3   :  { %122 = vst.msk [vmem:[#allocation2] sm:$0xff] %vm27_vm0, %v120_v14 }
  0xe9   :  { %v128_v16 = vld [vmem:[#allocation2 + $0x8] sm:$0xff] }
  0xea   :  { %v127_v17 = vld [vmem:[#allocation2] sm:$0xff]  ;;  %v137_v20 = vadd.f32 %v209_v15, %v128_v16 }
  0xeb   :  { %v136_v19 = vadd.f32 %v209_v15, %v127_v17 }
  0xec   :  { %v141_v24 = vadd.f32 %v139_v21, %v137_v20 }
  0xed   :  { %v140_v22 = vadd.f32 %v138_v18, %v136_v19 }
  0xee   :  { %v145_v25 = vsel %vm27_vm0, %v141_v24, 0.0 }
  0xef   :  { %v142_v23 = vsel %vm27_vm0, %v140_v22, 0.0 }
  0xf0   :  { %143 = vadd.xlane.f32.xlu0 %v142_v23 }
  0xf4   :  { %146 = vadd.xlane.f32.xlu0 %v145_v25 }
 0x17d   :  { %v144_v26 = vpop.xlane.xlu0 %143 }
 0x17e   :  { %v149_v27 = vmul.f32 0.03125, %v144_v26 }
 0x180   :  { %v151_v28 = vsub.f32 %v140_v22, %v149_v27 }
 0x181   :  { %v147_v29 = vpop.xlane.xlu0 %146 }
 0x182   :  { %v150_v30 = vmul.f32 0.03125, %v147_v29  ;;  %v153_v31 = vmul.f32 %v151_v28, %v151_v28  ;;  %v188_v53 = vmul.f32 %v210_v52, %v151_v28 }
 0x184   :  { %v152_v32 = vsub.f32 %v141_v24, %v150_v30  ;;  %v155_v33 = vsel %vm27_vm0, %v153_v31, 0.0 }
 0x185   :  { %156 = vadd.xlane.f32.xlu1 %v155_v33 }
 0x186   :  { %v154_v34 = vmul.f32 %v152_v32, %v152_v32  ;;  %v189_v57 = vmul.f32 %v210_v52, %v152_v32 }
 0x188   :  { %v158_v35 = vsel %vm27_vm0, %v154_v34, 0.0 }
 0x189   :  { %159 = vadd.xlane.f32.xlu1 %v158_v35 }
 0x212   :  { %v157_v36 = vpop.xlane.xlu1 %156 }
 0x213   :  { %v161_v37 = vmul.f32 0.032258064, %v157_v36 }
 0x215   :  { %238 = vrsqrt.f32 %v161_v37  ;;  %vm165_vm1 = vcmp.eq.f32.partialorder %v161_v37, inf  ;;  %v168_v42 = vand.u32 2147483648, %v161_v37  ;;  %vm167_vm2 = vcmp.eq.f32.partialorder %v161_v37, 0.0 }
 0x216   :  { %v160_v38 = vpop.xlane.xlu1 %159 }
 0x217   :  { %v162_v39 = vmul.f32 0.032258064, %v160_v38 }
 0x219   :  { %240 = vrsqrt.f32 %v162_v39  ;;  %vm172_vm3 = vcmp.eq.f32.partialorder %v162_v39, inf  ;;  %v175_v48 = vand.u32 2147483648, %v162_v39  ;;  %vm174_vm4 = vcmp.eq.f32.partialorder %v162_v39, 0.0 }
 0x21f   :  { %v239_v40 = vpop.eup %238 }
 0x220   :  { %v164_v41 = vmul.f32 %v239_v40, %v161_v37 }
 0x222   :  { %v166_v43 = vsel %vm165_vm1, %v161_v37, %v164_v41 }
 0x223   :  { %v241_v44 = vpop.eup %240  ;;  %v169_v45 = vsel %vm167_vm2, %v168_v42, %v166_v43 }
 0x224   :  { %v177_v46 = vadd.f32 1e-06, %v169_v45  ;;  %v171_v47 = vmul.f32 %v241_v44, %v162_v39 }
 0x226   :  { %242 = vrcp.f32 %v177_v46  ;;  %v173_v49 = vsel %vm172_vm3, %v162_v39, %v171_v47 }
 0x227   :  { %v176_v50 = vsel %vm174_vm4, %v175_v48, %v173_v49 }
 0x228   :  { %v178_v51 = vadd.f32 1e-06, %v176_v50 }
 0x22a   :  { %244 = vrcp.f32 %v178_v51 }
 0x230   :  { %v243_v54 = vpop.eup %242 }
 0x231   :  { %v190_v56 = vmul.f32 %v243_v54, %v188_v53 }
 0x233   :  { %v199_v58 = vadd.f32 %v211_v55, %v190_v56 }
 0x234   :  { %v245_v59 = vpop.eup %244 }
 0x235   :  { %201 = vst.msk [vmem:[%s339_s6] sm:$0xff] %vm27_vm0, %v199_v58  ;;  %v191_v60 = vmul.f32 %v245_v59, %v189_v57 }
 0x237   :  { %v200_v61 = vadd.f32 %v211_v55, %v191_v60 }
 0x239   :  { %202 = vst.msk [vmem:[%s339_s6 + $0x8] sm:$0xff] %vm27_vm0, %v200_v61 }

// kernel: decoder_layer.11
= control target key start
LH: loop header
LB: loop body
LE: loop exit
PB: predicated region body
PF: predicated region fallthrough
CT: control target
= control target key end

     0   :  { %vm27_vm0 = vcmask 261120   ;;  %s194_s1 = inlined_call_operand.vmem [shape: f32[32,32], index: 1, kind: input, shape index: {}]   ;;  %s195_s0 = inlined_call_operand.vmem [shape: f32[16,32], index: 0, kind: input, shape index: {}]   ;;  %s196_s2 = inlined_call_operand.vmem [shape: f32[1,32], index: 2, kind: input, shape index: {}]   ;;  %s197_s3 = inlined_call_operand.vmem [shape: f32[16,32], index: 3, kind: output, shape index: {}]  }
   0x1   :  { %v16_v0 = vld [vmem:[%s194_s1] sm:$0xff]  ;;  %v17_v1 = vld [vmem:[%s194_s1 + $0x8] sm:$0xff]  ;;  %v18_v2 = vld [vmem:[%s194_s1 + $0x10] sm:$0xff] }
   0x2   :  { %v135_v3 = vpack.c.bf16 %v17_v1, %v16_v0  ;;  %v19_v4 = vld [vmem:[%s194_s1 + $0x18] sm:$0xff]  ;;  %v14_v5 = vld [vmem:[%s195_s0] sm:$0xff]  ;;  %v15_v7 = vld [vmem:[%s195_s0 + $0x8] sm:$0xff] }
   0x3   :  { %v139_v6 = vpack.c.bf16 %v19_v4, %v18_v2  ;;  %132 = vmatprep.mubr.msk.f32.mxu0 %vm27_vm0, %v14_v5  ;;  %v115_v8 = vld [vmem:[%s196_s2] ss:$0 sm:$0xff] }
   0x4   :  { %136 = vmatprep.subr.bf16.mxu0 %v135_v3 }
   0x5   :  { %138 = vmatpush3.bf16.msra.mxu0 %v135_v3 }
   0x6   :  { %140 = vmatprep.subr.bf16.mxu0 %v139_v6 }
   0x9   :  { %142 = vmatpush3.bf16.msra.mxu0 %v139_v6 }
   0xc   :  { %133 = vmatmul.mubr.msk.f32.vlgmr.msra.gmra.mrb[0].mxu0 %vm27_vm0, %v15_v7 }
  0xdf   :  { %v134_v9 = vpop.f32.mrb[0].mxu0 }
  0xe0   :  { %v106_v10 = vadd.f32 %v134_v9, %v115_v8  ;;  %v100_v11 = vpop.f32.mrb[1].mxu0 }
  0xe1   :  { %v101_v12 = vadd.f32 %v115_v8, %v100_v11 }
  0xe2   :  { %110 = vst.msk [vmem:[%s197_s3 + $0x8] sm:$0xff] %vm27_vm0, %v106_v10 }
  0xe3   :  { %109 = vst.msk [vmem:[%s197_s3] sm:$0xff] %vm27_vm0, %v101_v12 }

// kernel: decoder_layer.8
= control target key start
LH: loop header
LB: loop body
LE: loop exit
PB: predicated region body
PF: predicated region fallthrough
CT: control target
= control target key end

     0   :  { %vm27_vm0 = vcmask 261120   ;;  %vm109_vm1 = vcmask 785408   ;;  %s191_s1 = inlined_call_operand.vmem [shape: f32[32,96], index: 1, kind: input, shape index: {}]   ;;  %s192_s0 = inlined_call_operand.vmem [shape: f32[16,32], index: 0, kind: input, shape index: {}]   ;;  %s193_s2 = inlined_call_operand.vmem [shape: f32[1,96], index: 2, kind: input, shape index: {}]   ;;  %s194_s3 = inlined_call_operand.vmem [shape: f32[16,96], index: 3, kind: output, shape index: {}]  }
   0x1   :  { %v16_v0 = vld [vmem:[%s191_s1] sm:$0xff]  ;;  %v17_v1 = vld [vmem:[%s191_s1 + $0x8] sm:$0xff]  ;;  %v18_v2 = vld [vmem:[%s191_s1 + $0x10] sm:$0xff] }
   0x2   :  { %v136_v3 = vpack.c.bf16 %v17_v1, %v16_v0  ;;  %v19_v4 = vld [vmem:[%s191_s1 + $0x18] sm:$0xff]  ;;  %v14_v5 = vld [vmem:[%s192_s0] sm:$0xff]  ;;  %v15_v7 = vld [vmem:[%s192_s0 + $0x8] sm:$0xff] }
   0x3   :  { %v140_v6 = vpack.c.bf16 %v19_v4, %v18_v2  ;;  %133 = vmatprep.mubr.msk.f32.mxu0 %vm27_vm0, %v14_v5  ;;  %v116_v8 = vld [vmem:[%s193_s2] ss:$0 sm:$0xff] }
   0x4   :  { %137 = vmatprep.subr.bf16.mxu0 %v136_v3 }
   0x5   :  { %139 = vmatpush3.bf16.msra.mxu0 %v136_v3 }
   0x6   :  { %141 = vmatprep.subr.bf16.mxu0 %v140_v6 }
   0x9   :  { %143 = vmatpush3.bf16.msra.mxu0 %v140_v6 }
   0xc   :  { %134 = vmatmul.mubr.msk.f32.vlgmr.msra.gmra.mrb[0].mxu0 %vm27_vm0, %v15_v7 }
  0xdf   :  { %v135_v9 = vpop.f32.mrb[0].mxu0 }
  0xe0   :  { %v106_v10 = vadd.f32 %v135_v9, %v116_v8  ;;  %v100_v11 = vpop.f32.mrb[1].mxu0 }
  0xe1   :  { %v101_v12 = vadd.f32 %v116_v8, %v100_v11 }
  0xe2   :  { %111 = vst.msk [vmem:[%s194_s3 + $0x8] sm:$0xff] %vm109_vm1, %v106_v10 }
  0xe3   :  { %110 = vst.msk [vmem:[%s194_s3] sm:$0xff] %vm109_vm1, %v101_v12 }

// kernel: decoder_layer.9
= control target key start
LH: loop header
LB: loop body
LE: loop exit
PB: predicated region body
PF: predicated region fallthrough
CT: control target
= control target key end

     0   :  { %s1229_s12 = smov 0   ;;  %s1231_s13 = smov 0   ;;  %s1346_s0 = inlined_call_operand.vmem [shape: f32[2,8,96], index: 0, kind: input, shape index: {}, may-alias: {0,1}]   ;;  %s1347_s1 = inlined_call_operand.vmem [shape: f32[2,8,96], index: 1, kind: input, shape index: {}, may-alias: {0,1}]   ;;  %s1348_s2 = inlined_call_operand.vmem [shape: f32[2,1,8], index: 2, kind: input, shape index: {}]   ;;  %s1349_s3 = inlined_call_operand.vmem [shape: f32[2,8,32], index: 3, kind: output, shape index: {}]  }
   0x1   :  { %s1233_s14 = smov 0  }
   0x2 LB: > { %s25_s15 = sadd.s32 1, %s1186_s13  ;;  %p1037_p0 = scmp.ge.s32.totalorder %s1190_s14, 1  ;;  %s1190_s14 = sphi %s1233_s14, %s13_s14   ;;  %s1186_s13 = sphi %s1231_s13, %s1351_s13   ;;  %s1182_s12 = sphi %s1229_s12, %s1350_s12  }
   0x3   : > { %p27_p1 = scmp.ge.s32.totalorder %s25_s15, 2  ;;  %p172_p2 = scmp.lt.s32.totalorder %s1190_s14, 3 }
   0x5   : > { %s1353_s15 = smov (%p27_p1, %s25_s15), 0  ;;  %p173_p3 = pnand %p1037_p0, %p172_p2 }
   0x6   : > { %p207_p4 = scmp.lt.s32.totalorder (!%p173_p3), %s1182_s12, 1  ;;  %v1192_v0 = vmov (!%p173_p3), 0.0   ;;  %vm1193_vm0 = vmmov (!%p173_p3), 0   ;;  %s1194_s20 = smov (!%p173_p3), 96   ;;  %vm236_vm1 = vcmask (!%p173_p3), 64512   ;;  %v313_v5 = vlaneseq (!%p173_p3) }
   0x7   : > { %176 = sbr.rel (%p173_p3) target bundleno = 1220 (0x4c4), region = 32  ;;  %1071 = vmatprep.subr.mxu0 (!%p173_p3), %v1192_v0  ;;  %1073 = vmatprep.mubr.msk.f32.mxu0 (!%p173_p3), %vm1193_vm0, %v1192_v0  ;;  %s1195_s24 = smov (!%p173_p3), 64   ;;  %v1202_v9 = vmov (!%p173_p3), 0   ;;  %vm582_vm4 = vcmask (!%p173_p3), 130112   ;;  %vm759_vm5 = vcmask (!%p173_p3), 195712   ;;  %vm936_vm6 = vcmask (!%p173_p3), 261312  }
   0x8   : > { %1076 = vmatprep.subr.mxu1 (!%p173_p3), %v1192_v0  ;;  %1078 = vmatprep.mubr.msk.f32.mxu1 (!%p173_p3), %vm1193_vm0, %v1192_v0  ;;  %s1196_s25 = smov (!%p173_p3), 88   ;;  %s1197_s26 = smov (!%p173_p3), 120   ;;  %v314_v7 = vshrl.u32 (!%p173_p3), %v313_v5, 7 }
   0x9   : > { %s1198_s27 = smov (!%p173_p3), 80   ;;  %s1199_s28 = smov (!%p173_p3), 112  }
   0xa   : > { %s1200_s29 = smov (!%p173_p3), 72   ;;  %s1201_s30 = smov (!%p173_p3), 104   ;;  %v315_v8 = vsub.s32 (!%p173_p3), 0, %v314_v7 }
   0xb   : > { %s1203_s7 = smov (!%p173_p3), 56   ;;  %s1204_s8 = smov (!%p173_p3), 48  }
   0xc   : > { %s1205_s9 = smov (!%p173_p3), 40   ;;  %s1206_s17 = smov (!%p173_p3), 8  }
   0xd   : > { %s1208_s18 = smov (!%p173_p3), 24  }
   0xe   : > { %s1355_s12 = smov (!%p207_p4, %s1182_s12), 1 }
   0xf   : > { %s1256_s16 = sshll.u32 %s1355_s12, 3  ;;  %s220_s6 = scalar_lea.vmem %s1348_s2, %s1355_s12 }
  0x10   : > { %s217_s19 = scalar_lea.vmem %s1347_s1, %s1256_s16  ;;  %s213_s23 = scalar_lea.vmem %s1346_s0, %s1256_s16  ;;  %v228_v6 = vld [vmem:[%s220_s6] sm:$0x1] }
  0x11   : > { %v1262_v1 = vld [vmem:[%s217_s19] sm:$0xff]  ;;  %vm229_vm2 = vcmp.ne.f32.partialorder %v228_v6, 0.0  ;;  %s1330_s12 = scalar_lea.vmem %s1349_s3, %s1256_s16  ;;  %s1207_s16 = smov 16  }
  0x12   : > { %234 = vrot.lane.b32.xlu0 %v1262_v1, %s1194_s20  ;;  %v230_v2 = vld [vmem:[%s213_s23] sm:$0xff]  ;;  %328 = vrot.lane.b32.xlu1 %v1262_v1, %s1195_s24  ;;  %v312_v10 = vsel %vm229_vm2, 1, %v1202_v9 }
  0x13   : > { %v231_v4 = vmul.f32 0.35355338, %v230_v2  ;;  %v316_v11 = vrot.slane %v312_v10, %v315_v8 }
  0x15   : > { %vm317_vm3 = vcmp.eq.s32.totalorder %v316_v11, 1 }
  0x16   : > { %414 = vrot.lane.b32.xlu1 %v1262_v1, %s1196_s25 }
  0x1a   : > { %411 = vrot.lane.b32.xlu1 %v231_v4, %s1197_s26 }
  0x1e   : > { %591 = vrot.lane.b32.xlu1 %v1262_v1, %s1198_s27 }
  0x22   : > { %588 = vrot.lane.b32.xlu1 %v231_v4, %s1199_s28 }
  0x26   : > { %768 = vrot.lane.b32.xlu1 %v1262_v1, %s1200_s29 }
  0x2a   : > { %765 = vrot.lane.b32.xlu1 %v231_v4, %s1201_s30 }
  0x84   : > { %v235_v3 = vpop.permute.xlu0 %234  ;;  %v329_v16 = vpop.permute.xlu1 %328 }
  0x85   : > { %1072 = vmatpush3.xpose.msk.msra.mxu0 %vm236_vm1, %v235_v3  ;;  %1077 = vmatpush3.msra.mxu1 %v329_v16 }
  0x86   : > { %1086 = vmatprep.subr.mxu0 %v1192_v0  ;;  %1081 = vmatprep.subr.mxu1 %v1192_v0 }
  0x88   : > { %1074 = vmatmul.mubr.msk.f32.vlgmr.msra.gmra.mrb[0].mxu0 %vm236_vm1, %v231_v4  ;;  %v415_v17 = vpop.permute.xlu1 %414 }
  0x89   : > { %1088 = vmatprep.mubr.msk.f32.mxu0 %vm1193_vm0, %v1192_v0 }
  0x8c   : > { %v412_v20 = vpop.permute.xlu1 %411 }
  0x90   : > { %v592_v22 = vpop.permute.xlu1 %591 }
  0x94   : > { %v589_v23 = vpop.permute.xlu1 %588 }
  0x98   : > { %v769_v25 = vpop.permute.xlu1 %768 }
  0x9c   : > { %v766_v26 = vpop.permute.xlu1 %765 }
 0x15b   : > { %v308_v12 = vpop.f32.mrb[0].mxu0 }
 0x15c   : > { %v318_v13 = vsel %vm317_vm3, %v308_v12, -1e+09  ;;  %v1075_v14 = vpop.f32.mrb[1].mxu0 }
 0x15d   : > { %v319_v15 = vsel %vm236_vm1, %v318_v13, -inf }
 0x15e   : > { %320 = vmax.xlane.f32.xlu0 %v319_v15 }
 0x174   : > { %500 = vrot.lane.b32.xlu0 %v1262_v1, %s1203_s7 }
 0x1eb   : > { %v321_v18 = vpop.xlane.xlu0 %320 }
 0x1ec   : > { %v322_v19 = vsub.f32 %v318_v13, %v321_v18 }
 0x1ee   : > { %v323_v21 = vmul.f32 1.442695, %v322_v19 }
 0x1ef   : > { %v501_v27 = vpop.permute.xlu0 %500 }
 0x1f0   : > { %1152 = vpow2.f32 %v323_v21  ;;  %1087 = vmatpush3.msra.mxu0 %v501_v27 }
 0x1f1   : > { %1096 = vmatprep.subr.mxu0 %v1192_v0 }
 0x1fa   : > { %v1286_v24 = vpop.eup %1152 }
 0x1fb   : > { %1079 = vmatmul.mubr.msk.f32.vlgmr.msra.gmra.mrb[0].mxu1 %vm236_vm1, %v1286_v24  ;;  %v325_v59 = vsel %vm236_vm1, %v1286_v24, 0.0 }
 0x1fc   : > { %1082 = vmatpush3.xpose.msk.msra.mxu1 %vm236_vm1, %v415_v17  ;;  %1083 = vmatprep.mubr.msk.f32.mxu1 %vm1193_vm0, %v1192_v0 }
 0x1fd   : > { %1091 = vmatprep.subr.mxu1 %v1192_v0 }
 0x1ff   : > { %1084 = vmatmul.mubr.msk.f32.vlgmr.msra.gmra.mrb[2].mxu1 %vm236_vm1, %v412_v20 }
 0x200   : > { %1092 = vmatpush3.xpose.msk.msra.mxu1 %vm236_vm1, %v592_v22  ;;  %1093 = vmatprep.mubr.msk.f32.mxu1 %vm1193_vm0, %v1192_v0 }
 0x201   : > { %1101 = vmatprep.subr.mxu1 %v1192_v0 }
 0x203   : > { %1094 = vmatmul.mubr.msk.f32.vlgmr.msra.gmra.mrb[4].mxu1 %vm236_vm1, %v589_v23 }
 0x204   : > { %1102 = vmatpush3.xpose.msk.msra.mxu1 %vm236_vm1, %v769_v25  ;;  %1103 = vmatprep.mubr.msk.f32.mxu1 %vm1193_vm0, %v1192_v0 }
 0x207   : > { %1104 = vmatmul.mubr.msk.f32.vlgmr.msra.gmra.mrb[6].mxu1 %vm236_vm1, %v766_v26 }
 0x2ce   : > { %v400_v28 = vpop.f32.mrb[0].mxu1 }
 0x2cf   : > { %v1080_v29 = vpop.f32.mrb[1].mxu1 }
 0x2d2   : > { %v486_v30 = vpop.f32.mrb[2].mxu1 }
 0x2d3   : > { %v490_v31 = vsel %vm317_vm3, %v486_v30, -1e+09  ;;  %v1085_v32 = vpop.f32.mrb[3].mxu1 }
 0x2d4   : > { %v491_v33 = vsel %vm236_vm1, %v490_v31, -inf }
 0x2d5   : > { %492 = vmax.xlane.f32.xlu1 %v491_v33 }
 0x2d6   : > { %v663_v34 = vpop.f32.mrb[4].mxu1 }
 0x2d7   : > { %v667_v35 = vsel %vm317_vm3, %v663_v34, -1e+09  ;;  %v1095_v36 = vpop.f32.mrb[5].mxu1 }
 0x2d8   : > { %v668_v37 = vsel %vm236_vm1, %v667_v35, -inf }
 0x2d9   : > { %669 = vmax.xlane.f32.xlu0 %v668_v37 }
 0x2da   : > { %v840_v38 = vpop.f32.mrb[6].mxu1 }
 0x2db   : > { %v844_v39 = vsel %vm317_vm3, %v840_v38, -1e+09  ;;  %v1105_v40 = vpop.f32.mrb[7].mxu1 }
 0x2dc   : > { %v845_v41 = vsel %vm236_vm1, %v844_v39, -inf }
 0x2dd   : > { %846 = vmax.xlane.f32.xlu0 %v845_v41 }
 0x2e6   : > { %677 = vrot.lane.b32.xlu1 %v1262_v1, %s1204_s8 }
 0x2f3   : > { %854 = vrot.lane.b32.xlu0 %v1262_v1, %s1205_s9 }
 0x362   : > { %v493_v42 = vpop.xlane.xlu1 %492 }
 0x363   : > { %v494_v43 = vsub.f32 %v490_v31, %v493_v42 }
 0x365   : > { %v495_v44 = vmul.f32 1.442695, %v494_v43 }
 0x366   : > { %v670_v45 = vpop.xlane.xlu0 %669  ;;  %v678_v51 = vpop.permute.xlu1 %677 }
 0x367   : > { %1154 = vpow2.f32 %v495_v44  ;;  %v671_v46 = vsub.f32 %v667_v35, %v670_v45 }
 0x369   : > { %v672_v47 = vmul.f32 1.442695, %v671_v46 }
 0x36a   : > { %v847_v48 = vpop.xlane.xlu0 %846 }
 0x36b   : > { %1156 = vpow2.f32 %v672_v47  ;;  %v848_v49 = vsub.f32 %v844_v39, %v847_v48 }
 0x36d   : > { %v849_v50 = vmul.f32 1.442695, %v848_v49 }
 0x36e   : > { %v855_v54 = vpop.permute.xlu0 %854 }
 0x36f   : > { %1158 = vpow2.f32 %v849_v50 }
 0x371   : > { %v1155_v52 = vpop.eup %1154 }
 0x372   : > { %1089 = vmatmul.mubr.msk.f32.vlgmr.msra.gmra.mrb[2].mxu0 %vm236_vm1, %v1155_v52  ;;  %v497_v53 = vsel %vm236_vm1, %v1155_v52, 0.0 }
 0x373   : > { %1097 = vmatpush3.msra.mxu0 %v678_v51  ;;  %498 = vadd.xlane.f32.xlu0 %v497_v53 }
 0x374   : > { %1098 = vmatprep.mubr.msk.f32.mxu0 %vm1193_vm0, %v1192_v0  ;;  %1106 = vmatprep.subr.mxu0 %v1192_v0 }
 0x375   : > { %v1157_v55 = vpop.eup %1156 }
 0x376   : > { %1099 = vmatmul.mubr.msk.f32.vlgmr.msra.gmra.mrb[4].mxu0 %vm236_vm1, %v1157_v55  ;;  %v674_v56 = vsel %vm236_vm1, %v1157_v55, 0.0 }
 0x377   : > { %1107 = vmatpush3.msra.mxu0 %v855_v54  ;;  %675 = vadd.xlane.f32.xlu1 %v674_v56 }
 0x378   : > { %1108 = vmatprep.mubr.msk.f32.mxu0 %vm1193_vm0, %v1192_v0 }
 0x379   : > { %v1159_v57 = vpop.eup %1158 }
 0x37a   : > { %1109 = vmatmul.mubr.msk.f32.vlgmr.msra.gmra.mrb[6].mxu0 %vm236_vm1, %v1159_v57  ;;  %v851_v58 = vsel %vm236_vm1, %v1159_v57, 0.0 }
 0x37b   : > { %852 = vadd.xlane.f32.xlu0 %v851_v58 }
 0x37f   : > { %326 = vadd.xlane.f32.xlu0 %v325_v59 }
 0x400   : > { %v499_v60 = vpop.xlane.xlu0 %498 }
 0x404   : > { %v676_v1 = vpop.xlane.xlu1 %675 }
 0x408   : > { %v853_v61 = vpop.xlane.xlu0 %852 }
 0x40c   : > { %v327_v62 = vpop.xlane.xlu0 %326 }
 0x40d   : > { %1160 = vrcp.f32 %v327_v62 }
 0x40e   : > { %1162 = vrcp.f32 %v499_v60 }
 0x40f   : > { %1164 = vrcp.f32 %v676_v1 }
 0x410   : > { %1166 = vrcp.f32 %v853_v61 }
 0x417   : > { %v1161_v63 = vpop.eup %1160 }
 0x418   : > { %v405_v0 = vmul.f32 %v1161_v63, %v400_v28  ;;  %v1163_v2 = vpop.eup %1162 }
 0x419   : > { %v1165_v6 = vpop.eup %1164 }
 0x41a   : > { %406 = vst.msk [vmem:[%s1330_s12] sm:$0xff] %vm236_vm1, %v405_v0  ;;  %v1167_v10 = vpop.eup %1166 }
 0x445   : > { %v572_v3 = vpop.f32.mrb[2].mxu0 }
 0x446   : > { %v577_v4 = vmul.f32 %v1163_v2, %v572_v3  ;;  %v1090_v5 = vpop.f32.mrb[3].mxu0 }
 0x448   : > { %579 = vrot.lane.b32.xlu0 %v577_v4, %s1206_s17 }
 0x449   : > { %v749_v7 = vpop.f32.mrb[4].mxu0 }
 0x44a   : > { %v754_v8 = vmul.f32 %v1165_v6, %v749_v7  ;;  %v1100_v9 = vpop.f32.mrb[5].mxu0 }
 0x44c   : > { %756 = vrot.lane.b32.xlu1 %v754_v8, %s1207_s16 }
 0x44d   : > { %v926_v11 = vpop.f32.mrb[6].mxu0 }
 0x44e   : > { %v931_v12 = vmul.f32 %v1167_v10, %v926_v11  ;;  %v1110_v13 = vpop.f32.mrb[7].mxu0 }
 0x450   : > { %933 = vrot.lane.b32.xlu0 %v931_v12, %s1208_s18 }
 0x4ba   : > { %v580_v14 = vpop.permute.xlu0 %579 }
 0x4bb   : > { %583 = vst.msk [vmem:[%s1330_s12] sm:$0xff] %vm582_vm4, %v580_v14 }
 0x4be   : > { %v757_v15 = vpop.permute.xlu1 %756 }
 0x4bf   : > { %760 = vst.msk [vmem:[%s1330_s12] sm:$0xff] %vm759_vm5, %v757_v15 }
 0x4c2   : > { %v934_v16 = vpop.permute.xlu0 %933 }
 0x4c3   : > { %937 = vst.msk [vmem:[%s1330_s12] sm:$0xff] %vm936_vm6, %v934_v16 }
 0x4c4 PF: > { %s13_s14 = sadd.s32 1, %s1190_s14   ;;  %s1350_s12 = smov %s1186_s13 }
 0x4c5   : > { %p10_p5 = scmp.ge.s32.totalorder %s13_s14, 4   ;;  %s1351_s13 = smov %s1353_s15 }
 0x4c7   :  { %12 = sbr.rel (!%p10_p5) target bundleno = 2 (0x2), region = 68 }

// kernel: decoder_layer.12
= control target key start
LH: loop header
LB: loop body
LE: loop exit
PB: predicated region body
PF: predicated region fallthrough
CT: control target
= control target key end

     0   :  { %vm27_vm0 = vcmask 261120   ;;  %vm109_vm1 = vcmask 523264   ;;  %s191_s1 = inlined_call_operand.vmem [shape: f32[32,64], index: 1, kind: input, shape index: {}]   ;;  %s192_s0 = inlined_call_operand.vmem [shape: f32[16,32], index: 0, kind: input, shape index: {}]   ;;  %s193_s2 = inlined_call_operand.vmem [shape: f32[1,64], index: 2, kind: input, shape index: {}]   ;;  %s194_s3 = inlined_call_operand.vmem [shape: f32[16,64], index: 3, kind: output, shape index: {}]  }
   0x1   :  { %v16_v0 = vld [vmem:[%s191_s1] sm:$0xff]  ;;  %v17_v1 = vld [vmem:[%s191_s1 + $0x8] sm:$0xff]  ;;  %v18_v2 = vld [vmem:[%s191_s1 + $0x10] sm:$0xff] }
   0x2   :  { %v136_v3 = vpack.c.bf16 %v17_v1, %v16_v0  ;;  %v19_v4 = vld [vmem:[%s191_s1 + $0x18] sm:$0xff]  ;;  %v14_v5 = vld [vmem:[%s192_s0] sm:$0xff]  ;;  %v15_v7 = vld [vmem:[%s192_s0 + $0x8] sm:$0xff] }
   0x3   :  { %v140_v6 = vpack.c.bf16 %v19_v4, %v18_v2  ;;  %133 = vmatprep.mubr.msk.f32.mxu0 %vm27_vm0, %v14_v5  ;;  %v116_v8 = vld [vmem:[%s193_s2] ss:$0 sm:$0xff] }
   0x4   :  { %137 = vmatprep.subr.bf16.mxu0 %v136_v3 }
   0x5   :  { %139 = vmatpush3.bf16.msra.mxu0 %v136_v3 }
   0x6   :  { %141 = vmatprep.subr.bf16.mxu0 %v140_v6 }
   0x9   :  { %143 = vmatpush3.bf16.msra.mxu0 %v140_v6 }
   0xc   :  { %134 = vmatmul.mubr.msk.f32.vlgmr.msra.gmra.mrb[0].mxu0 %vm27_vm0, %v15_v7 }
  0xdf   :  { %v135_v9 = vpop.f32.mrb[0].mxu0 }
  0xe0   :  { %v106_v10 = vadd.f32 %v135_v9, %v116_v8  ;;  %v100_v11 = vpop.f32.mrb[1].mxu0 }
  0xe1   :  { %v101_v12 = vadd.f32 %v116_v8, %v100_v11 }
  0xe2   :  { %111 = vst.msk [vmem:[%s194_s3 + $0x8] sm:$0xff] %vm109_vm1, %v106_v10 }
  0xe3   :  { %110 = vst.msk [vmem:[%s194_s3] sm:$0xff] %vm109_vm1, %v101_v12 }

// kernel: decoder_layer.15
= control target key start
LH: loop header
LB: loop body
LE: loop exit
PB: predicated region body
PF: predicated region fallthrough
CT: control target
= control target key end

     0   :  { %vm31_vm0 = vcmask 261120   ;;  %s558_s0 = inlined_call_operand.vmem [shape: f32[16,32], index: 0, kind: input, shape index: {}]   ;;  %s559_s1 = inlined_call_operand.vmem [shape: f32[32,64], index: 1, kind: input, shape index: {}]   ;;  %s560_s2 = inlined_call_operand.vmem [shape: f32[1,64], index: 2, kind: input, shape index: {}]   ;;  %s561_s3 = inlined_call_operand.vmem [shape: f32[64,32], index: 3, kind: input, shape index: {}]   ;;  %s562_s4 = inlined_call_operand.vmem [shape: f32[1,32], index: 4, kind: input, shape index: {}]   ;;  %s563_s5 = inlined_call_operand.vmem [shape: f32[1,32], index: 5, kind: input, shape index: {}]   ;;  %s564_s6 = inlined_call_operand.vmem [shape: f32[1,32], index: 6, kind: input, shape index: {}]   ;;  %s565_s7 = inlined_call_operand.hbm [shape: f32[16,32], index: 7, kind: output, shape index: {}]  }
   0x1   :  { %v36_v0 = vld [vmem:[%s559_s1] sm:$0xff]  ;;  %v37_v1 = vld [vmem:[%s559_s1 + $0x8] sm:$0xff]  ;;  %v38_v2 = vld [vmem:[%s559_s1 + $0x10] sm:$0xff] }
   0x2   :  { %v376_v3 = vpack.c.bf16 %v37_v1, %v36_v0  ;;  %v39_v4 = vld [vmem:[%s559_s1 + $0x18] sm:$0xff]  ;;  %v34_v5 = vld [vmem:[%s558_s0] sm:$0xff]  ;;  %v134_v8 = vld [vmem:[%s561_s3 + $0x8] sm:$0xff] }
   0x3   :  { %v380_v6 = vpack.c.bf16 %v39_v4, %v38_v2  ;;  %354 = vmatprep.mubr.msk.f32.mxu0 %vm31_vm0, %v34_v5  ;;  %v133_v7 = vld [vmem:[%s561_s3] sm:$0xff]  ;;  %v135_v9 = vld [vmem:[%s561_s3 + $0x10] sm:$0xff]  ;;  %v136_v11 = vld [vmem:[%s561_s3 + $0x18] sm:$0xff] }
   0x4   :  { %377 = vmatprep.subr.bf16.mxu0 %v376_v3  ;;  %v384_v10 = vpack.c.bf16 %v134_v8, %v133_v7  ;;  %v388_v12 = vpack.c.bf16 %v136_v11, %v135_v9  ;;  %v137_v13 = vld [vmem:[%s561_s3 + $0x20] sm:$0xff]  ;;  %v138_v14 = vld [vmem:[%s561_s3 + $0x28] sm:$0xff] }
   0x5   :  { %379 = vmatpush3.bf16.msra.mxu0 %v376_v3 }
   0x6   :  { %12 = vsyncpa [#allocation4], 0  ;;  %381 = vmatprep.subr.bf16.mxu0 %v380_v6  ;;  %385 = vmatprep.subr.bf16.mxu1 %v384_v10  ;;  %v392_v15 = vpack.c.bf16 %v138_v14, %v137_v13  ;;  %v35_v16 = vld [vmem:[%s558_s0 + $0x8] sm:$0xff]  ;;  %v139_v17 = vld [vmem:[%s561_s3 + $0x30] sm:$0xff]  ;;  %v436_v20 = vmov 0.0   ;;  %vm141_vm1 = vcmask 523264  }
   0x7   :  { %387 = vmatpush3.bf16.msra.mxu1 %v384_v10  ;;  %v140_v18 = vld [vmem:[%s561_s3 + $0x38] sm:$0xff]  ;;  %33 = vst.msk [vmem:[#allocation2 + $0x8] sm:$0xff] %vm31_vm0, %v436_v20  ;;  %32 = vst.msk [vmem:[#allocation2] sm:$0xff] %vm31_vm0, %v436_v20  ;;  %v322_v21 = vld [vmem:[%s560_s2] ss:$0 sm:$0xff]  ;;  %s437_s9 = smov [#allocation3]  }
   0x8   :  { %389 = vmatprep.subr.bf16.mxu1 %v388_v12  ;;  %v396_v19 = vpack.c.bf16 %v140_v18, %v139_v17  ;;  %v327_v34 = vld [vmem:[%s562_s4] ss:$0 sm:$0xff]  ;;  %s311_s10 = sshll.u32 %s437_s9, 4  ;;  %s312_s10 = int_to_ptr.vmem [resolvable:$true] %s311_s10 }
   0x9   :  { %383 = vmatpush3.bf16.msra.mxu0 %v380_v6  ;;  %v329_v8 = vld [vmem:[%s564_s6] ss:$0 sm:$0xff]  ;;  %p417_p1 = scmp.lt.s32.totalorder %s312_s10, %s312_s10 }
   0xb   :  { %391 = vmatpush3.bf16.msra.mxu1 %v388_v12 }
   0xc   :  { %355 = vmatmul.mubr.msk.f32.vlgmr.msra.gmra.mrb[0].mxu0 %vm31_vm0, %v35_v16  ;;  %393 = vmatprep.subr.bf16.mxu1 %v392_v15 }
   0xe   :  { %v132_v28 = vld [vmem:[#allocation2 + $0x8] sm:$0xff]  ;;  %v131_v29 = vld [vmem:[#allocation2] sm:$0xff] }
   0xf   :  { %395 = vmatpush3.bf16.msra.mxu1 %v392_v15 }
  0x10   :  { %397 = vmatprep.subr.bf16.mxu1 %v396_v19 }
  0x13   :  { %399 = vmatpush3.bf16.msra.mxu1 %v396_v19 }
  0xdf   :  { %v356_v22 = vpop.f32.mrb[0].mxu0 }
  0xe0   :  { %v126_v23 = vadd.f32 %v356_v22, %v322_v21  ;;  %v120_v24 = vpop.f32.mrb[1].mxu0 }
  0xe1   :  { %v121_v25 = vadd.f32 %v322_v21, %v120_v24 }
  0xe2   :  { %v130_v27 = vmax.f32 %v126_v23, 0.0 }
  0xe3   :  { %v129_v26 = vmax.f32 %v121_v25, 0.0 }
  0xe5   :  { %373 = vmatprep.mubr.msk.f32.mxu1 %vm141_vm1, %v129_v26 }
  0xe6   :  { %374 = vmatmul.mubr.msk.f32.vlgmr.msra.gmra.mrb[0].mxu1 %vm141_vm1, %v130_v27 }
 0x1b9   :  { %v375_v30 = vpop.f32.mrb[0].mxu1 }
 0x1ba   :  { %v224_v31 = vadd.f32 %v375_v30, %v132_v28  ;;  %v214_v32 = vpop.f32.mrb[1].mxu1 }
 0x1bb   :  { %v223_v33 = vadd.f32 %v214_v32, %v131_v29 }
 0x1bc   :  { %226 = vst.msk [vmem:[#allocation2 + $0x8] sm:$0xff] %vm31_vm0, %v224_v31 }
 0x1bd   :  { %225 = vst.msk [vmem:[#allocation2] sm:$0xff] %vm31_vm0, %v223_v33 }
 0x1c3   :  { %v231_v35 = vld [vmem:[#allocation2 + $0x8] sm:$0xff] }
 0x1c4   :  { %v230_v36 = vld [vmem:[#allocation2] sm:$0xff]  ;;  %v240_v38 = vadd.f32 %v327_v34, %v231_v35 }
 0x1c5   :  { %v239_v37 = vadd.f32 %v327_v34, %v230_v36 }
 0x1c6   :  { %v244_v41 = vadd.f32 %v240_v38, %v35_v16 }
 0x1c7   :  { %v243_v39 = vadd.f32 %v239_v37, %v34_v5  ;;  %v328_v5 = vld [vmem:[%s563_s5] ss:$0 sm:$0xff]  ;;  %s412_s5 = scalar_lea.vmem %s312_s10, 256 }
 0x1c8   :  { %v248_v42 = vsel %vm31_vm0, %v244_v41, 0.0  ;;  %p413_p0 = scmp.ne.s32.totalorder %s312_s10, %s412_s5  ;;  %p418_p2 = scmp.lt.s32.totalorder %s412_s5, %s412_s5 }
 0x1c9   :  { %v245_v40 = vsel %vm31_vm0, %v243_v39, 0.0 }
 0x1ca   :  { %246 = vadd.xlane.f32.xlu0 %v245_v40  ;;  %p419_p3 = por %p418_p2, %p417_p1 }
 0x1cc   :  { %p420_p4 = pnand %p419_p3, %p413_p0 }
 0x1ce   :  { %249 = vadd.xlane.f32.xlu0 %v248_v42 }
 0x257   :  { %v247_v43 = vpop.xlane.xlu0 %246 }
 0x258   :  { %v252_v44 = vmul.f32 0.03125, %v247_v43 }
 0x25a   :  { %v254_v45 = vsub.f32 %v243_v39, %v252_v44 }
 0x25b   :  { %v250_v46 = vpop.xlane.xlu0 %249 }
 0x25c   :  { %v253_v47 = vmul.f32 0.03125, %v250_v46  ;;  %v256_v48 = vmul.f32 %v254_v45, %v254_v45  ;;  %v291_v6 = vmul.f32 %v328_v5, %v254_v45 }
 0x25e   :  { %v255_v49 = vsub.f32 %v244_v41, %v253_v47  ;;  %v258_v50 = vsel %vm31_vm0, %v256_v48, 0.0 }
 0x25f   :  { %259 = vadd.xlane.f32.xlu1 %v258_v50 }
 0x260   :  { %v257_v51 = vmul.f32 %v255_v49, %v255_v49  ;;  %v292_v10 = vmul.f32 %v328_v5, %v255_v49 }
 0x262   :  { %v261_v52 = vsel %vm31_vm0, %v257_v51, 0.0 }
 0x263   :  { %262 = vadd.xlane.f32.xlu1 %v261_v52 }
 0x2ec   :  { %v260_v53 = vpop.xlane.xlu1 %259 }
 0x2ed   :  { %v264_v54 = vmul.f32 0.032258064, %v260_v53 }
 0x2ef   :  { %404 = vrsqrt.f32 %v264_v54  ;;  %vm268_vm2 = vcmp.eq.f32.partialorder %v264_v54, inf  ;;  %v271_v59 = vand.u32 2147483648, %v264_v54  ;;  %vm270_vm3 = vcmp.eq.f32.partialorder %v264_v54, 0.0 }
 0x2f0   :  { %v263_v55 = vpop.xlane.xlu1 %262 }
 0x2f1   :  { %v265_v56 = vmul.f32 0.032258064, %v263_v55 }
 0x2f3   :  { %406 = vrsqrt.f32 %v265_v56  ;;  %vm275_vm4 = vcmp.eq.f32.partialorder %v265_v56, inf  ;;  %v278_v1 = vand.u32 2147483648, %v265_v56  ;;  %vm277_vm5 = vcmp.eq.f32.partialorder %v265_v56, 0.0 }
 0x2f9   :  { %v405_v57 = vpop.eup %404 }
 0x2fa   :  { %v267_v58 = vmul.f32 %v405_v57, %v264_v54 }
 0x2fc   :  { %v269_v60 = vsel %vm268_vm2, %v264_v54, %v267_v58 }
 0x2fd   :  { %v407_v61 = vpop.eup %406  ;;  %v272_v62 = vsel %vm270_vm3, %v271_v59, %v269_v60 }
 0x2fe   :  { %v280_v63 = vadd.f32 1e-06, %v272_v62  ;;  %v274_v0 = vmul.f32 %v407_v61, %v265_v56 }
 0x300   :  { %408 = vrcp.f32 %v280_v63  ;;  %v276_v2 = vsel %vm275_vm4, %v265_v56, %v274_v0 }
 0x301   :  { %v279_v3 = vsel %vm277_vm5, %v278_v1, %v276_v2 }
 0x302   :  { %v281_v4 = vadd.f32 1e-06, %v279_v3 }
 0x304   :  { %410 = vrcp.f32 %v281_v4 }
 0x30a   :  { %v409_v7 = vpop.eup %408 }
 0x30b   :  { %v293_v9 = vmul.f32 %v409_v7, %v291_v6 }
 0x30d   :  { %v302_v11 = vadd.f32 %v329_v8, %v293_v9 }
 0x30e   :  { %v411_v12 = vpop.eup %410 }
 0x30f   :  { %v294_v13 = vmul.f32 %v411_v12, %v292_v10  ;;  %304 = vst.msk [vmem:[#allocation3] sm:$0xff] %vm31_vm0, %v302_v11 }
 0x311   :  { %v303_v14 = vadd.f32 %v329_v8, %v294_v13 }
 0x313   :  { %305 = vst.msk [vmem:[#allocation3 + $0x8] sm:$0xff] %vm31_vm0, %v303_v14 }
 0x314   :  { %423 = shalt.err (!%p420_p4)
}
 0x315   :  { %s424_s12 = scalar_lea.hbm %s565_s7, 256 }
 0x316   :  { %p425_p5 = scmp.ne.s32.totalorder %s565_s7, %s424_s12  ;;  %p428_p6 = scmp.lt.u32.totalorder %s424_s12, %s565_s7 }
 0x318   :  { %p430_p7 = pnand %p428_p6, %p425_p5 }
 0x31a   :  { %433 = shalt.err (!%p430_p7)
}
 0x31b   :  { %s438_s1 = smov 128   ;;  %s439_s17 = smov 8  }
 0x31c   :  { %317 = dma.vmem_to_hbm [thread:$0]  %s312_s10, 256, %s565_s7, [#allocation4], %s438_s1, %s438_s1, %s439_s17  }
 0x31d   :  { %434 = dma.done.wait [#allocation4], 256  }
 0x31e   :  { %435 = vsyncadd [#allocation4], 4294967040 }
 0x31f   :  { %321 = vsyncpa [#allocation4], 1 }

// kernel: decoder_layer.13
= control target key start
LH: loop header
LB: loop body
LE: loop exit
PB: predicated region body
PF: predicated region fallthrough
CT: control target
= control target key end

     0   :  { %s1219_s12 = smov 0   ;;  %s1221_s13 = smov 0   ;;  %s1328_s0 = inlined_call_operand.vmem [shape: f32[2,8,32], index: 0, kind: input, shape index: {}]   ;;  %s1329_s1 = inlined_call_operand.vmem [shape: f32[2,8,64], index: 1, kind: input, shape index: {}]   ;;  %s1330_s2 = inlined_call_operand.vmem [shape: f32[2,1,8], index: 2, kind: input, shape index: {}]   ;;  %s1331_s3 = inlined_call_operand.vmem [shape: f32[2,8,32], index: 3, kind: output, shape index: {}]  }
   0x1   :  { %s1223_s14 = smov 0  }
   0x2 LB: > { %s25_s15 = sadd.s32 1, %s1180_s13  ;;  %p1035_p0 = scmp.ge.s32.totalorder %s1184_s14, 1  ;;  %s1184_s14 = sphi %s1223_s14, %s13_s14   ;;  %s1180_s13 = sphi %s1221_s13, %s1333_s13   ;;  %s1176_s12 = sphi %s1219_s12, %s1332_s12  }
   0x3   : > { %p27_p1 = scmp.ge.s32.totalorder %s25_s15, 2  ;;  %p172_p2 = scmp.lt.s32.totalorder %s1184_s14, 3 }
   0x5   : > { %s1335_s15 = smov (%p27_p1, %s25_s15), 0  ;;  %p173_p3 = pnand %p1035_p0, %p172_p2 }
   0x6   : > { %p207_p4 = scmp.lt.s32.totalorder (!%p173_p3), %s1176_s12, 1  ;;  %v1186_v0 = vmov (!%p173_p3), 0.0   ;;  %vm1187_vm0 = vmmov (!%p173_p3), 0   ;;  %vm233_vm1 = vcmask (!%p173_p3), 64512   ;;  %s1188_s23 = smov (!%p173_p3), 120   ;;  %v311_v4 = vlaneseq (!%p173_p3) }
   0x7   : > { %176 = sbr.rel (%p173_p3) target bundleno = 1105 (0x451), region = 32  ;;  %1069 = vmatprep.subr.mxu0 (!%p173_p3), %v1186_v0  ;;  %1071 = vmatprep.mubr.msk.f32.mxu0 (!%p173_p3), %vm1187_vm0, %v1186_v0  ;;  %s1189_s24 = smov (!%p173_p3), 112   ;;  %v1191_v8 = vmov (!%p173_p3), 0   ;;  %vm580_vm4 = vcmask (!%p173_p3), 130112   ;;  %vm757_vm5 = vcmask (!%p173_p3), 195712   ;;  %vm934_vm6 = vcmask (!%p173_p3), 261312  }
   0x8   : > { %1074 = vmatprep.subr.mxu1 (!%p173_p3), %v1186_v0  ;;  %1076 = vmatprep.mubr.msk.f32.mxu1 (!%p173_p3), %vm1187_vm0, %v1186_v0  ;;  %s1190_s25 = smov (!%p173_p3), 104   ;;  %v312_v6 = vshrl.u32 (!%p173_p3), %v311_v4, 7  ;;  %s1192_s29 = smov (!%p173_p3), 96  }
   0x9   : > { %s1193_s30 = smov (!%p173_p3), 88   ;;  %s1194_s4 = smov (!%p173_p3), 72  }
   0xa   : > { %v313_v7 = vsub.s32 (!%p173_p3), 0, %v312_v6  ;;  %s1195_s5 = smov (!%p173_p3), 80   ;;  %s1196_s9 = smov (!%p173_p3), 8  }
   0xb   : > { %s1197_s10 = smov (!%p173_p3), 16   ;;  %s1198_s11 = smov (!%p173_p3), 24  }
   0xe   : > { %s1337_s12 = smov (!%p207_p4, %s1176_s12), 1 }
   0xf   : > { %s1243_s16 = sshll.u32 %s1337_s12, 3  ;;  %s220_s28 = scalar_lea.vmem %s1330_s2, %s1337_s12 }
  0x10   : > { %s213_s19 = scalar_lea.vmem %s1328_s0, %s1243_s16  ;;  %s217_s22 = scalar_lea.vmem %s1329_s1, %s1243_s16  ;;  %v228_v5 = vld [vmem:[%s220_s28] sm:$0x1] }
  0x11   : > { %v1253_v1 = vld [vmem:[%s217_s22] sm:$0xff]  ;;  %vm229_vm2 = vcmp.ne.f32.partialorder %v228_v5, 0.0  ;;  %s1312_s8 = scalar_lea.vmem %s1331_s3, %s1243_s16 }
  0x12   : > { %v230_v2 = vld [vmem:[%s213_s19] sm:$0xff]  ;;  %1070 = vmatpush3.xpose.msk.msra.mxu0 %vm233_vm1, %v1253_v1  ;;  %412 = vrot.lane.b32.xlu1 %v1253_v1, %s1188_s23  ;;  %v310_v9 = vsel %vm229_vm2, 1, %v1191_v8 }
  0x13   : > { %v231_v3 = vmul.f32 0.35355338, %v230_v2  ;;  %1084 = vmatprep.subr.mxu0 %v1186_v0  ;;  %v314_v10 = vrot.slane %v310_v9, %v313_v7 }
  0x15   : > { %1072 = vmatmul.mubr.msk.f32.vlgmr.msra.gmra.mrb[0].mxu0 %vm233_vm1, %v231_v3  ;;  %vm315_vm3 = vcmp.eq.s32.totalorder %v314_v10, 1 }
  0x16   : > { %1086 = vmatprep.mubr.msk.f32.mxu0 %vm1187_vm0, %v1186_v0  ;;  %409 = vrot.lane.b32.xlu1 %v231_v3, %s1188_s23 }
  0x1a   : > { %589 = vrot.lane.b32.xlu1 %v1253_v1, %s1189_s24 }
  0x1e   : > { %586 = vrot.lane.b32.xlu1 %v231_v3, %s1189_s24 }
  0x22   : > { %766 = vrot.lane.b32.xlu1 %v1253_v1, %s1190_s25 }
  0x26   : > { %763 = vrot.lane.b32.xlu1 %v231_v3, %s1190_s25 }
  0x2a   : > { %498 = vrot.lane.b32.xlu1 %v1253_v1, %s1193_s30 }
  0x84   : > { %v413_v15 = vpop.permute.xlu1 %412 }
  0x88   : > { %v410_v18 = vpop.permute.xlu1 %409 }
  0x8c   : > { %v590_v21 = vpop.permute.xlu1 %589 }
  0x90   : > { %v587_v22 = vpop.permute.xlu1 %586 }
  0x94   : > { %v767_v24 = vpop.permute.xlu1 %766 }
  0x98   : > { %v764_v25 = vpop.permute.xlu1 %763 }
  0x9c   : > { %v499_v26 = vpop.permute.xlu1 %498 }
  0x9d   : > { %1085 = vmatpush3.msra.mxu0 %v499_v26 }
  0x9e   : > { %1094 = vmatprep.subr.mxu0 %v1186_v0 }
  0xe8   : > { %v306_v11 = vpop.f32.mrb[0].mxu0 }
  0xe9   : > { %v316_v12 = vsel %vm315_vm3, %v306_v11, -1e+09  ;;  %v1073_v13 = vpop.f32.mrb[1].mxu0 }
  0xea   : > { %v317_v14 = vsel %vm233_vm1, %v316_v12, -inf }
  0xeb   : > { %318 = vmax.xlane.f32.xlu0 %v317_v14 }
 0x101   : > { %326 = vrot.lane.b32.xlu0 %v1253_v1, %s1192_s29 }
 0x178   : > { %v319_v16 = vpop.xlane.xlu0 %318 }
 0x179   : > { %v320_v17 = vsub.f32 %v316_v12, %v319_v16 }
 0x17b   : > { %v321_v19 = vmul.f32 1.442695, %v320_v17 }
 0x17c   : > { %v327_v20 = vpop.permute.xlu0 %326 }
 0x17d   : > { %1146 = vpow2.f32 %v321_v19  ;;  %1075 = vmatpush3.msra.mxu1 %v327_v20 }
 0x17e   : > { %1079 = vmatprep.subr.mxu1 %v1186_v0 }
 0x187   : > { %v1147_v23 = vpop.eup %1146 }
 0x188   : > { %1077 = vmatmul.mubr.msk.f32.vlgmr.msra.gmra.mrb[0].mxu1 %vm233_vm1, %v1147_v23  ;;  %v323_v55 = vsel %vm233_vm1, %v1147_v23, 0.0 }
 0x189   : > { %1080 = vmatpush3.xpose.msk.msra.mxu1 %vm233_vm1, %v413_v15  ;;  %1081 = vmatprep.mubr.msk.f32.mxu1 %vm1187_vm0, %v1186_v0 }
 0x18a   : > { %1089 = vmatprep.subr.mxu1 %v1186_v0 }
 0x18c   : > { %1082 = vmatmul.mubr.msk.f32.vlgmr.msra.gmra.mrb[2].mxu1 %vm233_vm1, %v410_v18 }
 0x18d   : > { %1090 = vmatpush3.xpose.msk.msra.mxu1 %vm233_vm1, %v590_v21  ;;  %1091 = vmatprep.mubr.msk.f32.mxu1 %vm1187_vm0, %v1186_v0 }
 0x18e   : > { %1099 = vmatprep.subr.mxu1 %v1186_v0 }
 0x190   : > { %1092 = vmatmul.mubr.msk.f32.vlgmr.msra.gmra.mrb[4].mxu1 %vm233_vm1, %v587_v22 }
 0x191   : > { %1100 = vmatpush3.xpose.msk.msra.mxu1 %vm233_vm1, %v767_v24  ;;  %1101 = vmatprep.mubr.msk.f32.mxu1 %vm1187_vm0, %v1186_v0 }
 0x194   : > { %1102 = vmatmul.mubr.msk.f32.vlgmr.msra.gmra.mrb[6].mxu1 %vm233_vm1, %v764_v25 }
 0x25b   : > { %v398_v27 = vpop.f32.mrb[0].mxu1 }
 0x25c   : > { %v1078_v28 = vpop.f32.mrb[1].mxu1 }
 0x25f   : > { %v484_v29 = vpop.f32.mrb[2].mxu1 }
 0x260   : > { %v488_v30 = vsel %vm315_vm3, %v484_v29, -1e+09  ;;  %v1083_v31 = vpop.f32.mrb[3].mxu1 }
 0x261   : > { %v489_v32 = vsel %vm233_vm1, %v488_v30, -inf }
 0x262   : > { %490 = vmax.xlane.f32.xlu1 %v489_v32 }
 0x263   : > { %v661_v33 = vpop.f32.mrb[4].mxu1 }
 0x264   : > { %v665_v34 = vsel %vm315_vm3, %v661_v33, -1e+09  ;;  %v1093_v35 = vpop.f32.mrb[5].mxu1 }
 0x265   : > { %v666_v36 = vsel %vm233_vm1, %v665_v34, -inf }
 0x266   : > { %667 = vmax.xlane.f32.xlu0 %v666_v36 }
 0x267   : > { %v838_v37 = vpop.f32.mrb[6].mxu1 }
 0x268   : > { %v842_v38 = vsel %vm315_vm3, %v838_v37, -1e+09  ;;  %v1103_v39 = vpop.f32.mrb[7].mxu1 }
 0x269   : > { %v843_v40 = vsel %vm233_vm1, %v842_v38, -inf }
 0x26a   : > { %844 = vmax.xlane.f32.xlu0 %v843_v40 }
 0x273   : > { %852 = vrot.lane.b32.xlu1 %v1253_v1, %s1194_s4 }
 0x280   : > { %675 = vrot.lane.b32.xlu0 %v1253_v1, %s1195_s5 }
 0x2ef   : > { %v491_v41 = vpop.xlane.xlu1 %490 }
 0x2f0   : > { %v492_v42 = vsub.f32 %v488_v30, %v491_v41 }
 0x2f2   : > { %v493_v43 = vmul.f32 1.442695, %v492_v42 }
 0x2f3   : > { %v668_v44 = vpop.xlane.xlu0 %667  ;;  %v853_v53 = vpop.permute.xlu1 %852 }
 0x2f4   : > { %1148 = vpow2.f32 %v493_v43  ;;  %v669_v45 = vsub.f32 %v665_v34, %v668_v44 }
 0x2f6   : > { %v670_v46 = vmul.f32 1.442695, %v669_v45 }
 0x2f7   : > { %v845_v47 = vpop.xlane.xlu0 %844 }
 0x2f8   : > { %1150 = vpow2.f32 %v670_v46  ;;  %v846_v48 = vsub.f32 %v842_v38, %v845_v47 }
 0x2fa   : > { %v847_v49 = vmul.f32 1.442695, %v846_v48 }
 0x2fb   : > { %v676_v50 = vpop.permute.xlu0 %675 }
 0x2fc   : > { %1152 = vpow2.f32 %v847_v49 }
 0x2fe   : > { %v1149_v51 = vpop.eup %1148 }
 0x2ff   : > { %1087 = vmatmul.mubr.msk.f32.vlgmr.msra.gmra.mrb[2].mxu0 %vm233_vm1, %v1149_v51  ;;  %v495_v52 = vsel %vm233_vm1, %v1149_v51, 0.0 }
 0x300   : > { %1095 = vmatpush3.msra.mxu0 %v676_v50  ;;  %496 = vadd.xlane.f32.xlu1 %v495_v52 }
 0x301   : > { %1096 = vmatprep.mubr.msk.f32.mxu0 %vm1187_vm0, %v1186_v0  ;;  %1104 = vmatprep.subr.mxu0 %v1186_v0 }
 0x302   : > { %v1151_v54 = vpop.eup %1150 }
 0x303   : > { %1097 = vmatmul.mubr.msk.f32.vlgmr.msra.gmra.mrb[4].mxu0 %vm233_vm1, %v1151_v54  ;;  %v672_v56 = vsel %vm233_vm1, %v1151_v54, 0.0 }
 0x304   : > { %1105 = vmatpush3.msra.mxu0 %v853_v53  ;;  %324 = vadd.xlane.f32.xlu1 %v323_v55 }
 0x305   : > { %673 = vadd.xlane.f32.xlu0 %v672_v56  ;;  %1106 = vmatprep.mubr.msk.f32.mxu0 %vm1187_vm0, %v1186_v0 }
 0x306   : > { %v1153_v57 = vpop.eup %1152 }
 0x307   : > { %1107 = vmatmul.mubr.msk.f32.vlgmr.msra.gmra.mrb[6].mxu0 %vm233_vm1, %v1153_v57  ;;  %v849_v58 = vsel %vm233_vm1, %v1153_v57, 0.0 }
 0x309   : > { %850 = vadd.xlane.f32.xlu0 %v849_v58 }
 0x38d   : > { %v497_v59 = vpop.xlane.xlu1 %496 }
 0x391   : > { %v325_v60 = vpop.xlane.xlu1 %324 }
 0x392   : > { %1154 = vrcp.f32 %v325_v60  ;;  %v674_v63 = vpop.xlane.xlu0 %673 }
 0x393   : > { %1156 = vrcp.f32 %v497_v59 }
 0x394   : > { %1158 = vrcp.f32 %v674_v63 }
 0x396   : > { %v851_v0 = vpop.xlane.xlu0 %850 }
 0x397   : > { %1160 = vrcp.f32 %v851_v0 }
 0x39c   : > { %v1155_v61 = vpop.eup %1154 }
 0x39d   : > { %v403_v62 = vmul.f32 %v1155_v61, %v398_v27  ;;  %v1157_v1 = vpop.eup %1156 }
 0x39e   : > { %v1159_v5 = vpop.eup %1158 }
 0x39f   : > { %404 = vst.msk [vmem:[%s1312_s8] sm:$0xff] %vm233_vm1, %v403_v62 }
 0x3a1   : > { %v1161_v9 = vpop.eup %1160 }
 0x3d2   : > { %v570_v2 = vpop.f32.mrb[2].mxu0 }
 0x3d3   : > { %v575_v3 = vmul.f32 %v1157_v1, %v570_v2  ;;  %v1088_v4 = vpop.f32.mrb[3].mxu0 }
 0x3d5   : > { %577 = vrot.lane.b32.xlu0 %v575_v3, %s1196_s9 }
 0x3d6   : > { %v747_v6 = vpop.f32.mrb[4].mxu0 }
 0x3d7   : > { %v752_v7 = vmul.f32 %v1159_v5, %v747_v6  ;;  %v1098_v8 = vpop.f32.mrb[5].mxu0 }
 0x3d9   : > { %754 = vrot.lane.b32.xlu1 %v752_v7, %s1197_s10 }
 0x3da   : > { %v924_v10 = vpop.f32.mrb[6].mxu0 }
 0x3db   : > { %v929_v11 = vmul.f32 %v1161_v9, %v924_v10  ;;  %v1108_v12 = vpop.f32.mrb[7].mxu0 }
 0x3dd   : > { %931 = vrot.lane.b32.xlu1 %v929_v11, %s1198_s11 }
 0x447   : > { %v578_v13 = vpop.permute.xlu0 %577 }
 0x448   : > { %581 = vst.msk [vmem:[%s1312_s8] sm:$0xff] %vm580_vm4, %v578_v13 }
 0x44b   : > { %v755_v14 = vpop.permute.xlu1 %754 }
 0x44c   : > { %758 = vst.msk [vmem:[%s1312_s8] sm:$0xff] %vm757_vm5, %v755_v14 }
 0x44f   : > { %v932_v15 = vpop.permute.xlu1 %931 }
 0x450   : > { %935 = vst.msk [vmem:[%s1312_s8] sm:$0xff] %vm934_vm6, %v932_v15 }
 0x451 PF: > { %s13_s14 = sadd.s32 1, %s1184_s14   ;;  %s1332_s12 = smov %s1180_s13 }
 0x452   : > { %p10_p5 = scmp.ge.s32.totalorder %s13_s14, 4   ;;  %s1333_s13 = smov %s1335_s15 }
 0x454   :  { %12 = sbr.rel (!%p10_p5) target bundleno = 2 (0x2), region = 68 }

</bundles_post_ra>
